<compile_context>
chip_gen: v5e
topology: v5e:2x2
jax: 0.10.0
libtpu: 0.0.40
codegen_flags: <defaults>
</compile_context>

<pallas_src>
import jax
import jax.numpy as jnp
from jax import lax
from jax.experimental import pallas as pl
from jax.experimental.pallas import tpu as pltpu

BN_EPS = 1e-5


# ----------------------------------------------------------------------------
# Kernel
# ----------------------------------------------------------------------------
def _encoder_kernel(x_ref, w1_ref, w23_ref, bn_ref, w45_ref, b45_ref, eps_ref, out_ref):
    d2 = w1_ref.shape[1]
    head = w45_ref.shape[1]          # packed head width (multiple of 128)
    n_zh = head // 2                 # lane offset of log_var inside the head block

    def mxu(h, w):
        # bf16 operands (MXU-native on v5e/v6e/v7x), f32 accumulation.
        return jnp.dot(h.astype(jnp.bfloat16), w, preferred_element_type=jnp.float32)

    bn = bn_ref[...]                 # (8, d2): rows [g1, be1, g2, be2, g3, be3, _, _]

    def bn_relu(h, idx):
        # Training-mode BatchNorm1d (batch statistics, biased variance), affine
        # folded into one scale/shift. Two-pass variance for numerical robustness.
        g = bn[2 * idx:2 * idx + 1, :]        # (1, d2) gamma
        be = bn[2 * idx + 1:2 * idx + 2, :]   # (1, d2) beta
        m = jnp.mean(h, axis=0, keepdims=True)
        c = h - m
        var = jnp.mean(c * c, axis=0, keepdims=True)
        return jnp.maximum(c * (g * lax.rsqrt(var + BN_EPS)) + be, 0.0)

    # Trunk. Pre-BN biases b1..b3 are dropped: a constant bias immediately before
    # batch-statistics BN cancels exactly in (h - mean) — a mathematical no-op.
    h = bn_relu(mxu(x_ref[...], w1_ref[...]), 0)
    h = bn_relu(mxu(h, w23_ref[:, 0:d2]), 1)
    h = bn_relu(mxu(h, w23_ref[:, d2:2 * d2]), 2)

    # Fused mu|log_var head packed into a single 128-lane-aligned block:
    # mu at lanes [0:n_z), log_var at lanes [n_zh:n_zh+n_z).
    mulv = mxu(h, w45_ref[...]) + b45_ref[...]            # (B, head) f32

    # Rotate log_var lanes down to [0:n_z) (XLU lane rotate, rides a free slot),
    # then reparameterize. eps is zero outside lanes [0:n_z), so other lanes are
    # unchanged / harmless.
    lv0 = pltpu.roll(mulv, shift=n_zh, axis=1)
    z_blk = mulv + eps_ref[...] * jnp.exp(lv0 * 0.5)      # z at lanes [0:n_z)

    # Lane-dense (B, 2*head) output slab: [ mu | lv | pad ][ z | ... ] — two
    # full-width unmasked vector stores at 128-aligned lane offsets.
    out_ref[:, 0:head] = mulv
    out_ref[:, head:2 * head] = z_blk


# ----------------------------------------------------------------------------
# Wrapper
# ----------------------------------------------------------------------------
def encoder_forward(x, params, eps_z):
    """x: (B, n_input) f32.  eps_z: (S, B, n_z) f32 — one N(0,1) draw per weight sample.
    Returns (z, mu, log_var), each (S, B, n_z) f32."""
    B, n_input = x.shape
    S = params["num_samples"]
    n_z, n_zh, head, d2 = params["n_z"], params["n_zh"], params["head"], params["d2"]

    # Cast x to bf16 on the wrapper side (it only ever feeds the bf16 MXU).
    x_bf16 = x.astype(jnp.bfloat16)
    # eps placed at lanes [0:n_z) of a 128-lane-aligned block, zero elsewhere.
    eps_p = jnp.zeros((S, B, head), jnp.float32).at[:, :, 0:n_z].set(eps_z)

    def sample_block(shape):
        # Per-sample block: leading sample dim squeezed out of the kernel ref.
        return pl.BlockSpec((None,) + shape, lambda s: (s,) + (0,) * len(shape))

    out = pl.pallas_call(
        _encoder_kernel,
        out_shape=jax.ShapeDtypeStruct((S, B, 2 * head), jnp.float32),
        grid=(S,),                                            # independent weight samples
        in_specs=[
            pl.BlockSpec((B, n_input), lambda s: (0, 0)),     # x (shared across samples)
            sample_block((n_input, d2)),                      # W1            bf16
            sample_block((d2, 2 * d2)),                       # [W2 | W3]     bf16
            sample_block((8, d2)),                            # packed BN params f32
            sample_block((d2, head)),                         # packed [W4|W5] bf16
            sample_block((1, head)),                          # packed [b4|b5] f32
            sample_block((B, head)),                          # eps           f32
        ],
        out_specs=sample_block((B, 2 * head)),
        compiler_params=pltpu.CompilerParams(
            dimension_semantics=("parallel",),                # megacore on v7x
        ),
    )(x_bf16, params["w1"], params["w23"], params["bn"],
      params["w45"], params["b45"], eps_p)

    mu = out[:, :, 0:n_z]
    log_var = out[:, :, n_zh:n_zh + n_z]
    z = out[:, :, head:head + n_z]
    return z, mu, log_var


# ----------------------------------------------------------------------------
# Parameter setup (wrapper glue): Bayes-by-backprop sampling of MLPLayer weights.
# ----------------------------------------------------------------------------
def _sample_mlp_layer(key, n_in, n_out, sigma_prior):
    k = jax.random.split(key, 6)
    w_mu = 0.01 * jax.random.normal(k[0], (n_in, n_out), jnp.float32)
    w_logvar = 0.01 * jax.random.normal(k[1], (n_in, n_out), jnp.float32)
    b_mu = 0.01 * jax.random.normal(k[2], (n_out,), jnp.float32)
    b_logvar = 0.01 * jax.random.normal(k[3], (n_out,), jnp.float32)
    eps_w = sigma_prior * jax.random.normal(k[4], (n_in, n_out), jnp.float32)
    eps_b = sigma_prior * jax.random.normal(k[5], (n_out,), jnp.float32)
    w = w_mu + jax.nn.softplus(w_logvar) * eps_w
    b = b_mu + jax.nn.softplus(b_logvar) * eps_b
    return w, b.reshape(1, n_out)


def make_encoder_params(key, n_input, dim_h, n_z, sigma_prior, num_samples=1):
    d2 = dim_h * 2
    n_zh = max(64, ((n_z + 63) // 64) * 64)   # lv lane offset; head = 2*n_zh is 128-aligned
    head = 2 * n_zh
    S = num_samples

    def sample_one(k):
        ks = jax.random.split(k, 5)
        w1, b1 = _sample_mlp_layer(ks[0], n_input, d2, sigma_prior)
        w2, b2 = _sample_mlp_layer(ks[1], d2, d2, sigma_prior)
        w3, b3 = _sample_mlp_layer(ks[2], d2, d2, sigma_prior)
        w4, b4 = _sample_mlp_layer(ks[3], d2, n_z, sigma_prior)
        w5, b5 = _sample_mlp_layer(ks[4], d2, n_z, sigma_prior)
        return dict(w1=w1, b1=b1, w2=w2, b2=b2, w3=w3, b3=b3,
                    w4=w4, b4=b4, w5=w5, b5=b5)

    raw = jax.vmap(sample_one)(jax.random.split(key, S))   # leading S dim on every array
    bf16 = lambda a: a.astype(jnp.bfloat16)

    # Packed BN params: one (S, 8, d2) input instead of six (1, d2) inputs.
    gamma = jnp.ones((d2,), jnp.float32)
    beta = jnp.zeros((d2,), jnp.float32)
    zero = jnp.zeros((d2,), jnp.float32)
    bn_one = jnp.stack([gamma, beta, gamma, beta, gamma, beta, zero, zero], axis=0)
    bn = jnp.broadcast_to(bn_one, (S, 8, d2)).astype(jnp.float32)

    # Packed head: W4 at lanes [0:n_z), W5 at lanes [n_zh:n_zh+n_z) — single 128-wide block.
    w45 = jnp.zeros((S, d2, head), jnp.float32)
    w45 = w45.at[:, :, 0:n_z].set(raw["w4"]).at[:, :, n_zh:n_zh + n_z].set(raw["w5"])
    b45 = jnp.zeros((S, 1, head), jnp.float32)
    b45 = b45.at[:, :, 0:n_z].set(raw["b4"]).at[:, :, n_zh:n_zh + n_z].set(raw["b5"])

    return {
        "n_z": n_z, "n_zh": n_zh, "head": head, "d2": d2, "num_samples": S,
        "w1": bf16(raw["w1"]),                                          # (S, n_input, d2)
        "w23": bf16(jnp.concatenate([raw["w2"], raw["w3"]], axis=-1)),  # (S, d2, 2*d2)
        "bn": bn,                                                       # (S, 8, d2)
        "w45": bf16(w45),                                               # (S, d2, head)
        "b45": b45,                                                     # (S, 1, head)
        "_ref": raw,   # f32 originals for the pure-JAX reference check
    }


# ----------------------------------------------------------------------------
# Pure-JAX reference in the ORIGINAL formulation (pre-BN biases, two-pass BN,
# separate heads); bf16 matmul operands to match the MXU precision choice.
# ----------------------------------------------------------------------------
def _reference_forward(x, params, eps_z):
    refs = params["_ref"]

    def one_sample(p, eps):
        def lin(h, w, b):
            return jnp.dot(h.astype(jnp.bfloat16), w.astype(jnp.bfloat16),
                           preferred_element_type=jnp.float32) + b

        def bn_relu(h):
            mean = jnp.mean(h, axis=0, keepdims=True)
            var = jnp.mean((h - mean) ** 2, axis=0, keepdims=True)
            return jnp.maximum((h - mean) * lax.rsqrt(var + BN_EPS), 0.0)

        h = bn_relu(lin(x, p["w1"], p["b1"]))
        h = bn_relu(lin(h, p["w2"], p["b2"]))
        h = bn_relu(lin(h, p["w3"], p["b3"]))
        mu = lin(h, p["w4"], p["b4"])
        lv = lin(h, p["w5"], p["b5"])
        z = mu + eps * jnp.exp(lv * 0.5)
        return z, mu, lv

    return jax.vmap(one_sample, in_axes=(0, 0))(refs, eps_z)


if __name__ == "__main__":
    # Small but MXU/lane-aligned config (MNIST-like would be n_input=784 -> pad).
    batch = 128
    n_input = 256
    dim_h = 64            # hidden width d2 = 128
    n_z = 32
    sigma_prior = 0.1
    num_samples = 2       # independent Bayes-by-backprop weight draws -> parallel grid axis

    root = jax.random.PRNGKey(0)
    k_x, k_params, k_eps = jax.random.split(root, 3)

    x = jax.random.normal(k_x, (batch, n_input), jnp.float32)
    params = make_encoder_params(k_params, n_input, dim_h, n_z, sigma_prior, num_samples)
    eps_z = jax.random.normal(k_eps, (num_samples, batch, n_z), jnp.float32)  # randn_like(std)

    z, mu, log_var = encoder_forward(x, params, eps_z)
    jax.block_until_ready((z, mu, log_var))

    assert z.shape == (num_samples, batch, n_z)
    assert mu.shape == (num_samples, batch, n_z)
    assert log_var.shape == (num_samples, batch, n_z)

    # Validate the kernel's transformations (dropped pre-BN biases, folded BN,
    # packed/fused head, lane rotation) against the original formulation.
    z_r, mu_r, lv_r = _reference_forward(x, params, eps_z)
    assert jnp.allclose(mu, mu_r, atol=2e-2, rtol=2e-2)
    assert jnp.allclose(log_var, lv_r, atol=2e-2, rtol=2e-2)
    assert jnp.allclose(z, z_r, atol=2e-2, rtol=2e-2)

    # TODO(synk): if batch ever exceeds VMEM, add a batch grid with partial-sum BN
    # statistics in VMEM scratch and a pl.when finalize pass (stats must cover the
    # full batch).

    print("KERNEL_OK")
</pallas_src>

<mosaic_0001>
module attributes {stable_mosaic.version = 11 : i64} {
  func.func @_encoder_kernel(%arg0: i32, %arg1: memref<128x256xbf16, #tpu.memory_space<vmem>>, %arg2: memref<1x256x128xbf16, #tpu.memory_space<vmem>>, %arg3: memref<1x128x256xbf16, #tpu.memory_space<vmem>>, %arg4: memref<1x8x128xf32, #tpu.memory_space<vmem>>, %arg5: memref<1x128x128xbf16, #tpu.memory_space<vmem>>, %arg6: memref<1x1x128xf32, #tpu.memory_space<vmem>>, %arg7: memref<1x128x128xf32, #tpu.memory_space<vmem>>, %arg8: memref<1x128x256xf32, #tpu.memory_space<vmem>>) attributes {dimension_semantics = [#tpu.dimension_semantics<parallel>], iteration_bounds = array<i64: 2>, scalar_prefetch = 0 : i64, scratch_operands = 0 : i64, tpu.core_type = #tpu.core_type<tc>, window_params = [{pipeline_mode = #tpu.pipeline_mode<synchronous>, transform_indices = @transform_0, window_bounds = array<i64: 128, 256>}, {transform_indices = @transform_1, window_bounds = array<i64: 1, 256, 128>}, {transform_indices = @transform_2, window_bounds = array<i64: 1, 128, 256>}, {transform_indices = @transform_3, window_bounds = array<i64: 1, 8, 128>}, {transform_indices = @transform_4, window_bounds = array<i64: 1, 128, 128>}, {transform_indices = @transform_5, window_bounds = array<i64: 1, 1, 128>}, {transform_indices = @transform_6, window_bounds = array<i64: 1, 128, 128>}, {transform_indices = @transform_7, window_bounds = array<i64: 1, 128, 256>}]} {
    %c0 = arith.constant 0 : index
    %c0_0 = arith.constant 0 : index
    %c0_1 = arith.constant 0 : index
    %0 = vector.load %arg4[%c0, %c0_0, %c0_1] : memref<1x8x128xf32, #tpu.memory_space<vmem>>, vector<1x8x128xf32>
    %1 = vector.shape_cast %0 : vector<1x8x128xf32> to vector<8x128xf32>
    %c0_2 = arith.constant 0 : index
    %c0_3 = arith.constant 0 : index
    %2 = vector.load %arg1[%c0_2, %c0_3] : memref<128x256xbf16, #tpu.memory_space<vmem>>, vector<128x256xbf16>
    %c0_4 = arith.constant 0 : index
    %c0_5 = arith.constant 0 : index
    %c0_6 = arith.constant 0 : index
    %3 = vector.load %arg2[%c0_4, %c0_5, %c0_6] : memref<1x256x128xbf16, #tpu.memory_space<vmem>>, vector<1x256x128xbf16>
    %4 = vector.shape_cast %3 : vector<1x256x128xbf16> to vector<256x128xbf16>
    %cst = arith.constant dense<0.000000e+00> : vector<128x128xf32>
    %5 = tpu.matmul %2, %4, %cst {dimension_numbers = #tpu.dot_dimension_numbers<[1], [0], [0], [1], [0, 0, 1, 1], [], []>} : vector<128x256xbf16>, vector<256x128xbf16>, vector<128x128xf32> -> vector<128x128xf32>
    %6 = vector.extract_strided_slice %1 {offsets = [0, 0], sizes = [1, 128], strides = [1, 1]} : vector<8x128xf32> to vector<1x128xf32>
    %7 = vector.extract_strided_slice %1 {offsets = [1, 0], sizes = [1, 128], strides = [1, 1]} : vector<8x128xf32> to vector<1x128xf32>
    %cst_7 = arith.constant dense<0.000000e+00> : vector<128xf32>
    %8 = vector.multi_reduction <add>, %5, %cst_7 [0] : vector<128x128xf32> to vector<128xf32>
    %9 = vector.shape_cast %8 : vector<128xf32> to vector<1x128xf32>
    %cst_8 = arith.constant 1.280000e+02 : f32
    %10 = vector.broadcast %cst_8 : f32 to vector<1x128xf32>
    %11 = arith.divf %9, %10 : vector<1x128xf32>
    %12 = vector.broadcast %11 : vector<1x128xf32> to vector<128x128xf32>
    %13 = arith.subf %5, %12 : vector<128x128xf32>
    %14 = arith.mulf %13, %13 : vector<128x128xf32>
    %cst_9 = arith.constant dense<0.000000e+00> : vector<128xf32>
    %15 = vector.multi_reduction <add>, %14, %cst_9 [0] : vector<128x128xf32> to vector<128xf32>
    %16 = vector.shape_cast %15 : vector<128xf32> to vector<1x128xf32>
    %cst_10 = arith.constant 1.280000e+02 : f32
    %17 = vector.broadcast %cst_10 : f32 to vector<1x128xf32>
    %18 = arith.divf %16, %17 : vector<1x128xf32>
    %cst_11 = arith.constant 9.99999974E-6 : f32
    %19 = vector.broadcast %cst_11 : f32 to vector<1x128xf32>
    %20 = arith.addf %18, %19 : vector<1x128xf32>
    %21 = math.rsqrt %20 : vector<1x128xf32>
    %22 = arith.mulf %6, %21 : vector<1x128xf32>
    %23 = vector.broadcast %22 : vector<1x128xf32> to vector<128x128xf32>
    %24 = arith.mulf %13, %23 : vector<128x128xf32>
    %25 = vector.broadcast %7 : vector<1x128xf32> to vector<128x128xf32>
    %26 = arith.addf %24, %25 : vector<128x128xf32>
    %cst_12 = arith.constant 0.000000e+00 : f32
    %27 = vector.broadcast %cst_12 : f32 to vector<128x128xf32>
    %28 = arith.maximumf %26, %27 : vector<128x128xf32>
    %c0_13 = arith.constant 0 : index
    %c0_14 = arith.constant 0 : index
    %c0_15 = arith.constant 0 : index
    %29 = vector.load %arg3[%c0_13, %c0_14, %c0_15] : memref<1x128x256xbf16, #tpu.memory_space<vmem>>, vector<1x128x128xbf16>
    %30 = vector.shape_cast %29 : vector<1x128x128xbf16> to vector<128x128xbf16>
    %31 = arith.truncf %28 : vector<128x128xf32> to vector<128x128xbf16>
    %cst_16 = arith.constant dense<0.000000e+00> : vector<128x128xf32>
    %32 = tpu.matmul %31, %30, %cst_16 {dimension_numbers = #tpu.dot_dimension_numbers<[1], [0], [0], [1], [0, 0, 1, 1], [], []>} : vector<128x128xbf16>, vector<128x128xbf16>, vector<128x128xf32> -> vector<128x128xf32>
    %33 = vector.extract_strided_slice %1 {offsets = [2, 0], sizes = [1, 128], strides = [1, 1]} : vector<8x128xf32> to vector<1x128xf32>
    %34 = vector.extract_strided_slice %1 {offsets = [3, 0], sizes = [1, 128], strides = [1, 1]} : vector<8x128xf32> to vector<1x128xf32>
    %cst_17 = arith.constant dense<0.000000e+00> : vector<128xf32>
    %35 = vector.multi_reduction <add>, %32, %cst_17 [0] : vector<128x128xf32> to vector<128xf32>
    %36 = vector.shape_cast %35 : vector<128xf32> to vector<1x128xf32>
    %cst_18 = arith.constant 1.280000e+02 : f32
    %37 = vector.broadcast %cst_18 : f32 to vector<1x128xf32>
    %38 = arith.divf %36, %37 : vector<1x128xf32>
    %39 = vector.broadcast %38 : vector<1x128xf32> to vector<128x128xf32>
    %40 = arith.subf %32, %39 : vector<128x128xf32>
    %41 = arith.mulf %40, %40 : vector<128x128xf32>
    %cst_19 = arith.constant dense<0.000000e+00> : vector<128xf32>
    %42 = vector.multi_reduction <add>, %41, %cst_19 [0] : vector<128x128xf32> to vector<128xf32>
    %43 = vector.shape_cast %42 : vector<128xf32> to vector<1x128xf32>
    %cst_20 = arith.constant 1.280000e+02 : f32
    %44 = vector.broadcast %cst_20 : f32 to vector<1x128xf32>
    %45 = arith.divf %43, %44 : vector<1x128xf32>
    %cst_21 = arith.constant 9.99999974E-6 : f32
    %46 = vector.broadcast %cst_21 : f32 to vector<1x128xf32>
    %47 = arith.addf %45, %46 : vector<1x128xf32>
    %48 = math.rsqrt %47 : vector<1x128xf32>
    %49 = arith.mulf %33, %48 : vector<1x128xf32>
    %50 = vector.broadcast %49 : vector<1x128xf32> to vector<128x128xf32>
    %51 = arith.mulf %40, %50 : vector<128x128xf32>
    %52 = vector.broadcast %34 : vector<1x128xf32> to vector<128x128xf32>
    %53 = arith.addf %51, %52 : vector<128x128xf32>
    %cst_22 = arith.constant 0.000000e+00 : f32
    %54 = vector.broadcast %cst_22 : f32 to vector<128x128xf32>
    %55 = arith.maximumf %53, %54 : vector<128x128xf32>
    %c0_23 = arith.constant 0 : index
    %c0_24 = arith.constant 0 : index
    %c128 = arith.constant 128 : index
    %56 = vector.load %arg3[%c0_23, %c0_24, %c128] : memref<1x128x256xbf16, #tpu.memory_space<vmem>>, vector<1x128x128xbf16>
    %57 = vector.shape_cast %56 : vector<1x128x128xbf16> to vector<128x128xbf16>
    %58 = arith.truncf %55 : vector<128x128xf32> to vector<128x128xbf16>
    %cst_25 = arith.constant dense<0.000000e+00> : vector<128x128xf32>
    %59 = tpu.matmul %58, %57, %cst_25 {dimension_numbers = #tpu.dot_dimension_numbers<[1], [0], [0], [1], [0, 0, 1, 1], [], []>} : vector<128x128xbf16>, vector<128x128xbf16>, vector<128x128xf32> -> vector<128x128xf32>
    %60 = vector.extract_strided_slice %1 {offsets = [4, 0], sizes = [1, 128], strides = [1, 1]} : vector<8x128xf32> to vector<1x128xf32>
    %61 = vector.extract_strided_slice %1 {offsets = [5, 0], sizes = [1, 128], strides = [1, 1]} : vector<8x128xf32> to vector<1x128xf32>
    %cst_26 = arith.constant dense<0.000000e+00> : vector<128xf32>
    %62 = vector.multi_reduction <add>, %59, %cst_26 [0] : vector<128x128xf32> to vector<128xf32>
    %63 = vector.shape_cast %62 : vector<128xf32> to vector<1x128xf32>
    %cst_27 = arith.constant 1.280000e+02 : f32
    %64 = vector.broadcast %cst_27 : f32 to vector<1x128xf32>
    %65 = arith.divf %63, %64 : vector<1x128xf32>
    %66 = vector.broadcast %65 : vector<1x128xf32> to vector<128x128xf32>
    %67 = arith.subf %59, %66 : vector<128x128xf32>
    %68 = arith.mulf %67, %67 : vector<128x128xf32>
    %cst_28 = arith.constant dense<0.000000e+00> : vector<128xf32>
    %69 = vector.multi_reduction <add>, %68, %cst_28 [0] : vector<128x128xf32> to vector<128xf32>
    %70 = vector.shape_cast %69 : vector<128xf32> to vector<1x128xf32>
    %cst_29 = arith.constant 1.280000e+02 : f32
    %71 = vector.broadcast %cst_29 : f32 to vector<1x128xf32>
    %72 = arith.divf %70, %71 : vector<1x128xf32>
    %cst_30 = arith.constant 9.99999974E-6 : f32
    %73 = vector.broadcast %cst_30 : f32 to vector<1x128xf32>
    %74 = arith.addf %72, %73 : vector<1x128xf32>
    %75 = math.rsqrt %74 : vector<1x128xf32>
    %76 = arith.mulf %60, %75 : vector<1x128xf32>
    %77 = vector.broadcast %76 : vector<1x128xf32> to vector<128x128xf32>
    %78 = arith.mulf %67, %77 : vector<128x128xf32>
    %79 = vector.broadcast %61 : vector<1x128xf32> to vector<128x128xf32>
    %80 = arith.addf %78, %79 : vector<128x128xf32>
    %cst_31 = arith.constant 0.000000e+00 : f32
    %81 = vector.broadcast %cst_31 : f32 to vector<128x128xf32>
    %82 = arith.maximumf %80, %81 : vector<128x128xf32>
    %c0_32 = arith.constant 0 : index
    %c0_33 = arith.constant 0 : index
    %c0_34 = arith.constant 0 : index
    %83 = vector.load %arg5[%c0_32, %c0_33, %c0_34] : memref<1x128x128xbf16, #tpu.memory_space<vmem>>, vector<1x128x128xbf16>
    %84 = vector.shape_cast %83 : vector<1x128x128xbf16> to vector<128x128xbf16>
    %85 = arith.truncf %82 : vector<128x128xf32> to vector<128x128xbf16>
    %cst_35 = arith.constant dense<0.000000e+00> : vector<128x128xf32>
    %86 = tpu.matmul %85, %84, %cst_35 {dimension_numbers = #tpu.dot_dimension_numbers<[1], [0], [0], [1], [0, 0, 1, 1], [], []>} : vector<128x128xbf16>, vector<128x128xbf16>, vector<128x128xf32> -> vector<128x128xf32>
    %c0_36 = arith.constant 0 : index
    %c0_37 = arith.constant 0 : index
    %c0_38 = arith.constant 0 : index
    %87 = vector.load %arg6[%c0_36, %c0_37, %c0_38] : memref<1x1x128xf32, #tpu.memory_space<vmem>>, vector<1x1x128xf32>
    %88 = vector.shape_cast %87 : vector<1x1x128xf32> to vector<1x128xf32>
    %89 = vector.broadcast %88 : vector<1x128xf32> to vector<128x128xf32>
    %90 = arith.addf %86, %89 : vector<128x128xf32>
    %c64_i32 = arith.constant 64 : i32
    %91 = tpu.dynamic_rotate %90 by %c64_i32 dim 1 : vector<128x128xf32>, i32 -> vector<128x128xf32>
    %c0_39 = arith.constant 0 : index
    %c0_40 = arith.constant 0 : index
    %c0_41 = arith.constant 0 : index
    %92 = vector.load %arg7[%c0_39, %c0_40, %c0_41] : memref<1x128x128xf32, #tpu.memory_space<vmem>>, vector<1x128x128xf32>
    %93 = vector.shape_cast %92 : vector<1x128x128xf32> to vector<128x128xf32>
    %cst_42 = arith.constant 5.000000e-01 : f32
    %94 = vector.broadcast %cst_42 : f32 to vector<128x128xf32>
    %95 = arith.mulf %91, %94 : vector<128x128xf32>
    %96 = math.exp %95 : vector<128x128xf32>
    %97 = arith.mulf %93, %96 : vector<128x128xf32>
    %98 = arith.addf %90, %97 : vector<128x128xf32>
    %c0_43 = arith.constant 0 : index
    %c0_44 = arith.constant 0 : index
    %c0_45 = arith.constant 0 : index
    %99 = vector.load %arg8[%c0_43, %c0_44, %c0_45] : memref<1x128x256xf32, #tpu.memory_space<vmem>>, vector<1x128x128xf32>
    %100 = vector.shape_cast %99 : vector<1x128x128xf32> to vector<128x128xf32>
    %101 = vector.shape_cast %90 : vector<128x128xf32> to vector<1x128x128xf32>
    tpu.vector_store %arg8[%c0_43, %c0_44, %c0_45], %101 {strides = array<i32>} : memref<1x128x256xf32, #tpu.memory_space<vmem>>, vector<1x128x128xf32>,
    %c0_46 = arith.constant 0 : index
    %c0_47 = arith.constant 0 : index
    %c128_48 = arith.constant 128 : index
    %102 = vector.load %arg8[%c0_46, %c0_47, %c128_48] : memref<1x128x256xf32, #tpu.memory_space<vmem>>, vector<1x128x128xf32>
    %103 = vector.shape_cast %102 : vector<1x128x128xf32> to vector<128x128xf32>
    %104 = vector.shape_cast %98 : vector<128x128xf32> to vector<1x128x128xf32>
    tpu.vector_store %arg8[%c0_46, %c0_47, %c128_48], %104 {strides = array<i32>} : memref<1x128x256xf32, #tpu.memory_space<vmem>>, vector<1x128x128xf32>,
    return
  }
  func.func @transform_0(%arg0: i32) -> (i32, i32) {
    %c0_i32 = arith.constant 0 : i32
    %c0_i32_0 = arith.constant 0 : i32
    %c0_i32_1 = arith.constant 0 : i32
    return %c0_i32, %c0_i32_0 : i32, i32
  }
  func.func @transform_1(%arg0: i32) -> (i32, i32, i32) {
    %c0_i32 = arith.constant 0 : i32
    %c0_i32_0 = arith.constant 0 : i32
    %c0_i32_1 = arith.constant 0 : i32
    return %arg0, %c0_i32, %c0_i32_0 : i32, i32, i32
  }
  func.func @transform_2(%arg0: i32) -> (i32, i32, i32) {
    %c0_i32 = arith.constant 0 : i32
    %c0_i32_0 = arith.constant 0 : i32
    %c0_i32_1 = arith.constant 0 : i32
    return %arg0, %c0_i32, %c0_i32_0 : i32, i32, i32
  }
  func.func @transform_3(%arg0: i32) -> (i32, i32, i32) {
    %c0_i32 = arith.constant 0 : i32
    %c0_i32_0 = arith.constant 0 : i32
    %c0_i32_1 = arith.constant 0 : i32
    return %arg0, %c0_i32, %c0_i32_0 : i32, i32, i32
  }
  func.func @transform_4(%arg0: i32) -> (i32, i32, i32) {
    %c0_i32 = arith.constant 0 : i32
    %c0_i32_0 = arith.constant 0 : i32
    %c0_i32_1 = arith.constant 0 : i32
    return %arg0, %c0_i32, %c0_i32_0 : i32, i32, i32
  }
  func.func @transform_5(%arg0: i32) -> (i32, i32, i32) {
    %c0_i32 = arith.constant 0 : i32
    %c0_i32_0 = arith.constant 0 : i32
    %c0_i32_1 = arith.constant 0 : i32
    return %arg0, %c0_i32, %c0_i32_0 : i32, i32, i32
  }
  func.func @transform_6(%arg0: i32) -> (i32, i32, i32) {
    %c0_i32 = arith.constant 0 : i32
    %c0_i32_0 = arith.constant 0 : i32
    %c0_i32_1 = arith.constant 0 : i32
    return %arg0, %c0_i32, %c0_i32_0 : i32, i32, i32
  }
  func.func @transform_7(%arg0: i32) -> (i32, i32, i32) {
    %c0_i32 = arith.constant 0 : i32
    %c0_i32_0 = arith.constant 0 : i32
    %c0_i32_1 = arith.constant 0 : i32
    return %arg0, %c0_i32, %c0_i32_0 : i32, i32, i32
  }
}

</mosaic_0001>

<bundles_post_ra>
// kernel: tpu_custom_call.1
= control target key start
LH: loop header
LB: loop body
LE: loop exit
PB: predicated region body
PF: predicated region fallthrough
CT: control target
= control target key end

     0   :  { %s3505_s0 = inlined_call_operand.hbm [shape: bf16[128,256], index: 0, kind: input, shape index: {}]   ;;  %s3506_s1 = inlined_call_operand.hbm [shape: bf16[2,256,128], index: 1, kind: input, shape index: {}]   ;;  %s3507_s2 = inlined_call_operand.hbm [shape: bf16[2,128,256], index: 2, kind: input, shape index: {}]   ;;  %s3508_s3 = inlined_call_operand.hbm [shape: f32[2,8,128], index: 3, kind: input, shape index: {}]   ;;  %s3509_s4 = inlined_call_operand.hbm [shape: bf16[2,128,128], index: 4, kind: input, shape index: {}]   ;;  %s3510_s5 = inlined_call_operand.vmem [shape: f32[2,1,128], index: 5, kind: input, shape index: {}]   ;;  %s3511_s6 = inlined_call_operand.hbm [shape: f32[2,128,128], index: 6, kind: input, shape index: {}]   ;;  %s3512_s7 = inlined_call_operand.hbm [shape: f32[2,128,256], index: 7, kind: output, shape index: {}]  }
   0x1   :  { %3523 = sst [smem:[#allocation23_spill]] %s3505_s0 }
   0x2   :  { %3524 = sst [smem:[#allocation24_spill]] %s3506_s1 }
   0x3   :  { %3525 = sst [smem:[#allocation25_spill]] %s3507_s2 }
   0x4   :  { %3526 = sst [smem:[#allocation26_spill]] %s3508_s3 }
   0x5   :  { %3527 = sst [smem:[#allocation27_spill]] %s3510_s5 }
   0x6   :  { %3528 = sst [smem:[#allocation28_spill]] %s3512_s7 }
   0x7   :  { %12 = vsyncpa [#allocation3], 0 }
   0x8   :  { %13 = vsyncpa [#allocation6], 0 }
   0x9   :  { %15 = vsyncpa [#allocation6 + $0x1], 0 }
   0xa   :  { %16 = vsyncpa [#allocation9], 0 }
   0xb   :  { %18 = vsyncpa [#allocation9 + $0x1], 0 }
   0xc   :  { %19 = vsyncpa [#allocation12], 0 }
   0xd   :  { %21 = vsyncpa [#allocation12 + $0x1], 0 }
   0xe   :  { %22 = vsyncpa [#allocation4], 0 }
   0xf   :  { %24 = vsyncpa [#allocation4 + $0x1], 0  ;;  %s2731_s24 = smov 0   ;;  %s2733_s25 = smov 0  }
  0x10   :  { %s2735_s26 = smov 0   ;;  %s2737_s27 = smov 0  }
  0x11 LB: > { %3529 = sst [smem:[#allocation19_spill]] %s2676_s26  ;;  %s2752_s28 = sadd.s32 1, %s2680_s27   ;;  %s2680_s27 = sphi %s2737_s27, %s3551_s27   ;;  %s2676_s26 = sphi %s2735_s26, %s3553_s26   ;;  %s2672_s25 = sphi %s2733_s25, %s3555_s25   ;;  %s2668_s24 = sphi %s2731_s24, %s3554_s24  }
  0x12   : > { %3530 = sst [smem:[#allocation20_spill]] %s2752_s28  ;;  %s58_s29 = sadd.s32 1, %s2676_s26 }
  0x13   : > { %s55_s30 = ssub.s32 %s2680_s27, %s2752_s28  ;;  %p65_p0 = scmp.ne.s32.totalorder %s2676_s26, %s2672_s25 }
  0x14   : > { %p56_p1 = scmp.eq.s32.totalorder %s55_s30, 0  ;;  %p66_p2 = scmp.eq.s32.totalorder %s2680_s27, 0 }
  0x15   : > { %p2337_p4 = scmp.lt.s32.totalorder %s2680_s27, 2  ;;  %s3513_s9 = sand.u32 1, %s2680_s27  }
  0x16   : > { %s2763_s8 = scalar_select %p56_p1, %s2676_s26, %s58_s29  }
  0x17   : > { %p67_p5 = por %p66_p2, %p65_p0  ;;  %s2770_s10 = sand.u32 1, %s2676_s26  }
  0x18   : > { %3531 = sst [smem:[#allocation21_spill]] %s2763_s8  ;;  %s2773_s11 = sshll.u32 %s2770_s10, 7 }
  0x19   : > { %s2776_s12 = sshll.u32 %s2680_s27, 7  ;;  %s3532_s1 = sld [smem:[#allocation24_spill]] }
  0x1a   : > { %s269_s17 = scalar_lea.vmem [#allocation5], %s2773_s11  ;;  %p2785_p6 = pnand %p2337_p4, %p67_p5 }
  0x1b   : > { %s277_s18 = sshll.u32 %s269_s17, 4  ;;  %s1966_s20 = sshll.u32 %s2770_s10, 3  ;;  %s278_s18 = int_to_ptr.vmem [resolvable:$true] %s277_s18 }
  0x1c   : > { %s2792_s21 = scalar_lea.sflag [#allocation6], %s3513_s9  ;;  %p2796_p8 = pneg %p2785_p6 }
  0x1f   : > { %s274_s15 = scalar_lea.hbm %s3532_s1, %s2776_s12  ;;  %s2429_s14 = scalar_lea.hbm %s3532_s1, 256 }
  0x20   : > { %s275_s16 = sshll.u32 %s274_s15, 4  ;;  %s276_s16 = int_to_ptr.hbm [resolvable:$true] %s275_s16 }
  0x21   : > { %s2422_s22 = sshra.s32 %s276_s16, 4  ;;  %s2423_s22 = int_to_ptr.hbm [resolvable:$true] %s2422_s22 }
  0x22   : > { %s2424_s23 = scalar_lea.hbm %s2423_s22, 128  ;;  %p2430_p11 = scmp.lt.s32.totalorder %s2423_s22, %s3532_s1 }
  0x23   : > { %p2425_p7 = scmp.ne.s32.totalorder %s2423_s22, %s2424_s23  ;;  %p2431_p12 = scmp.lt.s32.totalorder %s2429_s14, %s2424_s23 }
  0x25   : > { %p2427_p9 = pnand %p2796_p8, %p2425_p7  ;;  %p2432_p13 = por %p2431_p12, %p2430_p11 }
  0x27   : > { %p2428_p10 = pneg %p2427_p9 }
  0x29   : > { %p2433_p1 = pnand %p2432_p13, %p2428_p10 }
  0x2b   : > { %2436 = shalt.err (!%p2433_p1)
}
  0x2c   : > { %s3518_s9 = smov 64   ;;  %s3519_s8 = smov 4  }
  0x2d   : > { %2319 = dma.hbm_to_vmem [thread:$0]  (!%p2785_p6), %s276_s16, 2048, %s278_s18, %s2792_s21, %s3518_s9, %s3518_s9, %s3519_s8  }
  0x2e   : > { %s1967_s30 = sshll.u32 %s2680_s27, 3  ;;  %s3535_s3 = sld [smem:[#allocation26_spill]] }
  0x2f   : > { %s313_s23 = scalar_lea.vmem [#allocation8], %s1966_s20  ;;  %s3536_s1 = sand.u32 1, %s2680_s27  }
  0x30   : > { %s321_s14 = sshll.u32 %s313_s23, 4  ;;  %s2820_s28 = scalar_lea.sflag [#allocation9], %s3536_s1  ;;  %s322_s14 = int_to_ptr.vmem [resolvable:$true] %s321_s14 }
  0x34   : > { %s317_s22 = scalar_lea.hbm %s3535_s3, %s1967_s30  ;;  %s2459_s13 = scalar_lea.hbm %s3535_s3, 16 }
  0x35   : > { %s319_s17 = sshll.u32 %s317_s22, 4  ;;  %s320_s17 = int_to_ptr.hbm [resolvable:$true] %s319_s17 }
  0x36   : > { %s2452_s7 = sshra.s32 %s320_s17, 4  ;;  %s2453_s7 = int_to_ptr.hbm [resolvable:$true] %s2452_s7 }
  0x37   : > { %s2454_s5 = scalar_lea.hbm %s2453_s7, 8  ;;  %p2460_p7 = scmp.lt.s32.totalorder %s2453_s7, %s3535_s3 }
  0x38   : > { %p2455_p2 = scmp.ne.s32.totalorder %s2453_s7, %s2454_s5  ;;  %p2461_p9 = scmp.lt.s32.totalorder %s2459_s13, %s2454_s5 }
  0x3a   : > { %p2457_p4 = pnand %p2455_p2, %p2796_p8  ;;  %p2462_p10 = por %p2461_p9, %p2460_p7 }
  0x3c   : > { %p2458_p5 = pneg %p2457_p4 }
  0x3e   : > { %p2463_p11 = pnand %p2462_p10, %p2458_p5 }
  0x40   : > { %2466 = shalt.err (!%p2463_p11)
}
  0x41   : > { %2325 = dma.hbm_to_vmem [thread:$0]  (!%p2785_p6), %s320_s17, 128, %s322_s14, %s2820_s28  }
  0x42   : > { %s2834_s1 = sadd.s32 4294967295, %s2680_s27   ;;  %s1956_s5 = sadd.s32 4294967294, %s2680_s27  }
  0x43   : > { %p71_p12 = scmp.ne.s32.totalorder %s2672_s25, %s2668_s24  ;;  %p72_p13 = scmp.eq.s32.totalorder %s2834_s1, 0 }
  0x44   : > { %p225_p1 = scmp.eq.s32.totalorder %s2834_s1, 1  ;;  %p231_p2 = scmp.eq.s32.totalorder %s1956_s5, 1 }
  0x45   : > { %p1957_p4 = scmp.ge.s32.totalorder %s2680_s27, 1  ;;  %p2844_p5 = por %p72_p13, %p71_p12 }
  0x46   : > { %p2851_p7 = por %p225_p1, %p65_p0  ;;  %p2855_p9 = por %p231_p2, %p71_p12 }
  0x47   : > { %p238_p10 = scmp.lt.s32.totalorder %s2680_s27, 3  ;;  %s3541_s0 = sld [smem:[#allocation23_spill]] }
  0x48   : > { %s3539_s22 = scalar_select %p2855_p9, 1, 0 }
  0x49   : > { %p2863_p11 = pnand %p1957_p4, %p238_p10  ;;  %s2684_s18 = smov [#allocation2]  }
  0x4a   : > { %3540 = sst [smem:[#allocation22_spill]] %s3539_s22  ;;  %s251_s13 = sshll.u32 %s2684_s18, 4  ;;  %s252_s13 = int_to_ptr.vmem [resolvable:$true] %s251_s13 }
  0x4b   : > { %p2312_p0 = pneg %p2863_p11  ;;  %s3543_s2 = sld [smem:[#allocation25_spill]] }
  0x4c   : > { %s291_s23 = scalar_lea.vmem [#allocation7], %s2773_s11  ;;  %s3522_s8 = smov 128  }
  0x4d   : > { %s249_s17 = sshll.u32 %s3541_s0, 4  ;;  %p2313_p12 = pnand %p2312_p0, %p72_p13  ;;  %s250_s17 = int_to_ptr.hbm [resolvable:$true] %s249_s17 }
  0x4e   : > { %s299_s14 = sshll.u32 %s291_s23, 4  ;;  %s2686_s0 = smov 8   ;;  %s300_s14 = int_to_ptr.vmem [resolvable:$true] %s299_s14 }
  0x4f   : > { %2315 = dma.hbm_to_vmem [thread:$0]  (!%p2313_p12), %s250_s17, 2048, %s252_s13, [#allocation3], %s3522_s8, %s3522_s8, %s2686_s0  }
  0x51   : > { %s296_s5 = scalar_lea.hbm %s3543_s2, %s2776_s12  ;;  %s2519_s23 = scalar_lea.hbm %s3543_s2, 256 }
  0x52   : > { %s297_s9 = sshll.u32 %s296_s5, 4  ;;  %s298_s9 = int_to_ptr.hbm [resolvable:$true] %s297_s9 }
  0x53   : > { %s2512_s18 = sshra.s32 %s298_s9, 4  ;;  %s2513_s18 = int_to_ptr.hbm [resolvable:$true] %s2512_s18 }
  0x54   : > { %s2514_s3 = scalar_lea.hbm %s2513_s18, 128  ;;  %p2520_p10 = scmp.lt.s32.totalorder %s2513_s18, %s3543_s2 }
  0x55   : > { %p2515_p1 = scmp.ne.s32.totalorder %s2513_s18, %s2514_s3  ;;  %p2521_p0 = scmp.lt.s32.totalorder %s2519_s23, %s2514_s3 }
  0x57   : > { %p2517_p2 = pnand %p2515_p1, %p2796_p8  ;;  %p2522_p3 = por %p2521_p0, %p2520_p10 }
  0x59   : > { %p2518_p4 = pneg %p2517_p2 }
  0x5b   : > { %p2523_p12 = pnand %p2522_p3, %p2518_p4 }
  0x5d   : > { %2526 = shalt.err (!%p2523_p12)
}
  0x5e   : > { %2322 = dma.hbm_to_vmem [thread:$0]  (!%p2785_p6), %s298_s9, 2048, %s300_s14, %s2792_s21, %s3522_s8, %s3522_s8, %s2686_s0  }
  0x5f   : > { %s1968_s17 = sshll.u32 %s2770_s10, 6  ;;  %s2213_s13 = sshll.u32 %s2680_s27, 6 }
  0x60   : > { %s337_s26 = scalar_lea.hbm %s3509_s4, %s2213_s13  ;;  %s332_s18 = scalar_lea.vmem [#allocation10], %s1968_s17 }
  0x61   : > { %s338_s3 = sshll.u32 %s337_s26, 4  ;;  %s340_s23 = sshll.u32 %s332_s18, 4  ;;  %s339_s3 = int_to_ptr.hbm [resolvable:$true] %s338_s3  ;;  %s341_s23 = int_to_ptr.vmem [resolvable:$true] %s340_s23 }
  0x62   : > { %s2542_s5 = sshra.s32 %s339_s3, 4  ;;  %s2549_s21 = scalar_lea.hbm %s3509_s4, 128  ;;  %s2543_s5 = int_to_ptr.hbm [resolvable:$true] %s2542_s5 }
  0x63   : > { %s2544_s2 = scalar_lea.hbm %s2543_s5, 64  ;;  %p2550_p4 = scmp.lt.s32.totalorder %s2543_s5, %s3509_s4 }
  0x64   : > { %p2545_p3 = scmp.ne.s32.totalorder %s2543_s5, %s2544_s2  ;;  %p2551_p10 = scmp.lt.s32.totalorder %s2549_s21, %s2544_s2 }
  0x66   : > { %p2547_p1 = pnand %p2545_p3, %p2796_p8  ;;  %p2552_p0 = por %p2551_p10, %p2550_p4 }
  0x68   : > { %p2548_p2 = pneg %p2547_p1 }
  0x6a   : > { %p2553_p12 = pnand %p2552_p0, %p2548_p2 }
  0x6c   : > { %2556 = shalt.err (!%p2553_p12)
}
  0x6d   : > { %s3544_s17 = smov 4   ;;  %s3545_s13 = smov 64  }
  0x6e   : > { %2328 = dma.hbm_to_vmem [thread:$0]  (!%p2785_p6), %s339_s3, 1024, %s341_s23, %s2820_s28, %s3545_s13, %s3545_s13, %s3544_s17  }
  0x6f   : > { %s365_s8 = scalar_lea.hbm %s3511_s6, %s2776_s12  ;;  %s360_s20 = scalar_lea.vmem [#allocation11], %s2773_s11 }
  0x70   : > { %s368_s2 = sshll.u32 %s360_s20, 4  ;;  %s366_s26 = sshll.u32 %s365_s8, 4  ;;  %s369_s2 = int_to_ptr.vmem [resolvable:$true] %s368_s2  ;;  %s367_s26 = int_to_ptr.hbm [resolvable:$true] %s366_s26 }
  0x71   : > { %s357_s18 = scalar_lea.sflag [#allocation12], %s2770_s10  ;;  %s2572_s5 = sshra.s32 %s367_s26, 4  ;;  %s2573_s5 = int_to_ptr.hbm [resolvable:$true] %s2572_s5 }
  0x72   : > { %s2574_s9 = scalar_lea.hbm %s2573_s5, 128  ;;  %s2579_s28 = scalar_lea.hbm %s3511_s6, 256 }
  0x73   : > { %p2575_p3 = scmp.ne.s32.totalorder %s2573_s5, %s2574_s9  ;;  %p2580_p4 = scmp.lt.s32.totalorder %s2573_s5, %s3511_s6 }
  0x74   : > { %p2581_p10 = scmp.lt.s32.totalorder %s2579_s28, %s2574_s9 }
  0x75   : > { %p2577_p1 = pnand %p2575_p3, %p2796_p8 }
  0x76   : > { %p2582_p0 = por %p2581_p10, %p2580_p4 }
  0x77   : > { %p2578_p2 = pneg %p2577_p1 }
  0x79   : > { %p2583_p12 = pnand %p2582_p0, %p2578_p2 }
  0x7b   : > { %2586 = shalt.err (!%p2583_p12)
}
  0x7c   : > { %s3546_s10 = smov 128   ;;  %380 = sbr.rel (%p2863_p11) target bundleno = 1626 (0x65a), region = 48 }
  0x7d   : > { %2331 = dma.hbm_to_vmem [thread:$0]  (!%p2785_p6), %s367_s26, 2048, %s369_s2, %s357_s18, %s3546_s10, %s3546_s10, %s2686_s0  }
  0x81   : > { %2647 = dma.done.wait (%p72_p13), [#allocation3], 2048  }
  0x82   : > { %2649 = vsyncadd (%p72_p13), [#allocation3], 4294965248  ;;  %s387_s11 = sand.u32 1, %s2834_s1   ;;  %s2939_s12 = sand.u32 1, %s2672_s25  }
  0x83   : > { %s1976_s19 = sshll.u32 %s2939_s12, 7  ;;  %s388_s29 = scalar_lea.sflag [#allocation6], %s387_s11 }
  0x84   : > { %s2942_s17 = scalar_lea.vmem [#allocation5], %s1976_s19 }
  0x85   : > { %2651 = dma.done.wait (%p2844_p5), %s388_s29, 4096  }
  0x86   : > { %2653 = vsyncadd (%p2844_p5), %s388_s29, 4294963200  ;;  %s1978_s0 = sshll.u32 %s2939_s12, 3  ;;  %s2949_s16 = scalar_lea.vmem [#allocation7], %s1976_s19 }
  0x87   : > { %s408_s13 = scalar_lea.sflag [#allocation9], %s387_s11  ;;  %s2951_s22 = scalar_lea.vmem [#allocation8], %s1978_s0 }
  0x88   : > { %2655 = dma.done.wait (%p2844_p5), %s408_s13, 1152  }
  0x89   : > { %2657 = vsyncadd (%p2844_p5), %s408_s13, 4294966144  ;;  %s1979_s30 = sshll.u32 %s2939_s12, 6  ;;  %s428_s20 = scalar_lea.sflag [#allocation12], %s2939_s12 }
  0x8a   : > { %s2958_s8 = scalar_lea.vmem [#allocation10], %s1979_s30  ;;  %s2961_s2 = scalar_lea.vmem [#allocation11], %s1976_s19 }
  0x8b   : > { %2659 = dma.done.wait (%p2844_p5), %s428_s20, 2048  }
  0x8c   : > { %2661 = vsyncadd (%p2844_p5), %s428_s20, 4294965248  ;;  %v2238_v0 = vld [vmem:[%s2942_s17 + $0x38] sm:$0xff]  ;;  %v2237_v1 = vld [vmem:[%s2942_s17 + $0x30] sm:$0xff]  ;;  %p486_p6 = scmp.lt.s32.totalorder %s2834_s1, 1  ;;  %s3547_s5 = sld [smem:[#allocation27_spill]] }
  0x8d   : > { %2272 = vmatpush.bf16.msra.mxu1 %v2238_v0  ;;  %714 = vmatpush.bf16.msra.mxu0 %v2238_v0  ;;  %v2236_v2 = vld [vmem:[%s2942_s17 + $0x28] sm:$0xff]  ;;  %v2235_v3 = vld [vmem:[%s2942_s17 + $0x20] sm:$0xff]  ;;  %v2234_v4 = vld [vmem:[%s2942_s17 + $0x18] sm:$0xff]  ;;  %s1981_s21 = sshll.u32 %s2939_s12, 8  ;;  %s2688_s23 = smov 64  }
  0x8e   : > { %2273 = vmatpush.bf16.msra.mxu2 %v2238_v0  ;;  %2274 = vmatpush.bf16.msra.mxu3 %v2238_v0  ;;  %v2233_v5 = vld [vmem:[%s2942_s17 + $0x10] sm:$0xff]  ;;  %v2232_v6 = vld [vmem:[%s2942_s17 + $0x8] sm:$0xff]  ;;  %v2231_v7 = vld [vmem:[%s2942_s17] sm:$0xff]  ;;  %s3278_s7 = scalar_select %p486_p6, %s2834_s1, 1 }
  0x8f   : > { %v2000_v8 = vld [vmem:[#allocation2 + $0x20] sm:$0xf]  ;;  %v2220_v9 = vld [vmem:[#allocation2 + $0x24] sm:$0xf0]  ;;  %v2246_v10 = vld [vmem:[%s2942_s17 + $0x78] sm:$0xff]  ;;  %s3312_s3 = scalar_lea.vmem [#allocation13], %s1981_s21 }
  0x90   : > { %v1984_v11 = vld [vmem:[#allocation2] sm:$0xf]  ;;  %v2216_v12 = vld [vmem:[#allocation2 + $0x4] sm:$0xf0]  ;;  %v2001_v13 = vor.u32 %v2220_v9, %v2000_v8  ;;  %v2245_v15 = vld [vmem:[%s2942_s17 + $0x70] sm:$0xff]  ;;  %s2271_s10 = sshll.u32 %s2834_s1, 8 }
  0x91   : > { %2275 = vmatpush.bf16.msra.mxu1 %v2237_v1  ;;  %715 = vmatpush.bf16.msra.mxu0 %v2237_v1  ;;  %v1985_v14 = vor.u32 %v2216_v12, %v1984_v11  ;;  %v2244_v16 = vld [vmem:[%s2942_s17 + $0x68] sm:$0xff]  ;;  %v2243_v17 = vld [vmem:[%s2942_s17 + $0x60] sm:$0xff]  ;;  %v2008_v18 = vld [vmem:[#allocation2 + $0x30] sm:$0xf]  ;;  %s3548_s29 = sld [smem:[#allocation28_spill]]  ;;  %s1773_s0 = sshll.u32 %s3312_s3, 4  ;;  %s1774_s0 = int_to_ptr.vmem [resolvable:$true] %s1773_s0 }
  0x92   : > { %2276 = vmatpush.bf16.msra.mxu2 %v2237_v1  ;;  %2277 = vmatpush.bf16.msra.mxu3 %v2237_v1  ;;  %v2222_v19 = vld [vmem:[#allocation2 + $0x34] sm:$0xf0]  ;;  %v1992_v20 = vld [vmem:[#allocation2 + $0x10] sm:$0xf]  ;;  %v2240_v26 = vld [vmem:[%s2942_s17 + $0x48] sm:$0xff]  ;;  %s488_s9 = scalar_lea.vmem %s3547_s5, %s3278_s7  ;;  %s1761_s13 = scalar_lea.sflag [#allocation4], %s2939_s12 }
  0x93   : > { %v2218_v21 = vld [vmem:[#allocation2 + $0x14] sm:$0xf0]  ;;  %v2009_v23 = vor.u32 %v2222_v19, %v2008_v18  ;;  %v2241_v25 = vld [vmem:[%s2942_s17 + $0x50] sm:$0xff]  ;;  %v2239_v27 = vld [vmem:[%s2942_s17 + $0x40] sm:$0xff] }
  0x94   : > { %v2242_v22 = vld [vmem:[%s2942_s17 + $0x58] sm:$0xff]  ;;  %v1993_v24 = vor.u32 %v2218_v21, %v1992_v20  ;;  %v2215_v28 = vld [vmem:[#allocation2 + $0x4] sm:$0xf]  ;;  %v1986_v29 = vld [vmem:[#allocation2 + $0x8] sm:$0xf0] }
  0x95   : > { %2278 = vmatpush.bf16.msra.mxu1 %v2236_v2  ;;  %716 = vmatpush.bf16.msra.mxu0 %v2236_v2  ;;  %v1989_v30 = vor.u32 %v2215_v28, %v1986_v29  ;;  %v2217_v31 = vld [vmem:[#allocation2 + $0x14] sm:$0xf]  ;;  %v1994_v32 = vld [vmem:[#allocation2 + $0x18] sm:$0xf0]  ;;  %v2016_v34 = vld [vmem:[#allocation2 + $0x40] sm:$0xf] }
  0x96   : > { %2279 = vmatpush.bf16.msra.mxu2 %v2236_v2  ;;  %2280 = vmatpush.bf16.msra.mxu3 %v2236_v2  ;;  %v1997_v33 = vor.u32 %v2217_v31, %v1994_v32  ;;  %v2224_v35 = vld [vmem:[#allocation2 + $0x44] sm:$0xf0]  ;;  %v2219_v37 = vld [vmem:[#allocation2 + $0x24] sm:$0xf]  ;;  %v2002_v38 = vld [vmem:[#allocation2 + $0x28] sm:$0xf0] }
  0x97   : > { %v2017_v36 = vor.u32 %v2224_v35, %v2016_v34  ;;  %v2005_v39 = vor.u32 %v2219_v37, %v2002_v38  ;;  %v2024_v40 = vld [vmem:[#allocation2 + $0x50] sm:$0xf]  ;;  %v2226_v41 = vld [vmem:[#allocation2 + $0x54] sm:$0xf0]  ;;  %v2221_v43 = vld [vmem:[#allocation2 + $0x34] sm:$0xf]  ;;  %s1772_s17 = scalar_lea.hbm %s3548_s29, %s2271_s10 }
  0x98   : > { %v2025_v42 = vor.u32 %v2226_v41, %v2024_v40  ;;  %v2010_v44 = vld [vmem:[#allocation2 + $0x38] sm:$0xf0]  ;;  %v2032_v46 = vld [vmem:[#allocation2 + $0x60] sm:$0xf]  ;;  %v2228_v47 = vld [vmem:[#allocation2 + $0x64] sm:$0xf0] }
  0x99   : > { %2281 = vmatpush.bf16.msra.mxu1 %v2235_v3  ;;  %717 = vmatpush.bf16.msra.mxu0 %v2235_v3  ;;  %v2013_v45 = vor.u32 %v2221_v43, %v2010_v44  ;;  %v2033_v48 = vor.u32 %v2228_v47, %v2032_v46  ;;  %v2223_v49 = vld [vmem:[#allocation2 + $0x44] sm:$0xf]  ;;  %v2018_v50 = vld [vmem:[#allocation2 + $0x48] sm:$0xf0]  ;;  %v2040_v52 = vld [vmem:[#allocation2 + $0x70] sm:$0xf] }
  0x9a   : > { %2282 = vmatpush.bf16.msra.mxu2 %v2235_v3  ;;  %2283 = vmatpush.bf16.msra.mxu3 %v2235_v3  ;;  %v2021_v51 = vor.u32 %v2223_v49, %v2018_v50  ;;  %v2230_v53 = vld [vmem:[#allocation2 + $0x74] sm:$0xf0]  ;;  %v2225_v55 = vld [vmem:[#allocation2 + $0x54] sm:$0xf]  ;;  %v2026_v56 = vld [vmem:[#allocation2 + $0x58] sm:$0xf0] }
  0x9b   : > { %v2041_v54 = vor.u32 %v2230_v53, %v2040_v52  ;;  %v2029_v57 = vor.u32 %v2225_v55, %v2026_v56  ;;  %v2227_v58 = vld [vmem:[#allocation2 + $0x64] sm:$0xf]  ;;  %v2034_v59 = vld [vmem:[#allocation2 + $0x68] sm:$0xf0]  ;;  %v2229_v63 = vld [vmem:[#allocation2 + $0x74] sm:$0xf] }
  0x9c   : > { %v2037_v60 = vor.u32 %v2227_v58, %v2034_v59  ;;  %v2042_v0 = vld [vmem:[#allocation2 + $0x78] sm:$0xf0]  ;;  %v2687_v47 = vmov 128.0   ;;  %s2622_s20 = scalar_lea.hbm %s3548_s29, 512 }
  0x9d   : > { %2284 = vmatpush.bf16.msra.mxu1 %v2234_v4  ;;  %718 = vmatpush.bf16.msra.mxu0 %v2234_v4  ;;  %v2045_v1 = vor.u32 %v2229_v63, %v2042_v0  ;;  %2382 = vrcp.f32 %v2687_v47  ;;  %v2136_v47 = vld [vmem:[%s2949_s16 + $0x60] sm:$0xf] }
  0x9e   : > { %2285 = vmatpush.bf16.msra.mxu2 %v2234_v4  ;;  %2286 = vmatpush.bf16.msra.mxu3 %v2234_v4 }
  0xa1   : > { %2287 = vmatpush.bf16.msra.mxu1 %v2233_v5  ;;  %719 = vmatpush.bf16.msra.mxu0 %v2233_v5 }
  0xa2   : > { %2288 = vmatpush.bf16.msra.mxu2 %v2233_v5  ;;  %2289 = vmatpush.bf16.msra.mxu3 %v2233_v5 }
  0xa5   : > { %2290 = vmatpush.bf16.msra.mxu1 %v2232_v6  ;;  %720 = vmatpush.bf16.msra.mxu0 %v2232_v6 }
  0xa6   : > { %2291 = vmatpush.bf16.msra.mxu2 %v2232_v6  ;;  %2292 = vmatpush.bf16.msra.mxu3 %v2232_v6 }
  0xa9   : > { %2293 = vmatpush.bf16.msra.mxu1 %v2231_v7  ;;  %721 = vmatpush.bf16.msra.mxu0 %v2231_v7 }
  0xaa   : > { %2294 = vmatpush.bf16.msra.mxu2 %v2231_v7  ;;  %2295 = vmatpush.bf16.msra.mxu3 %v2231_v7 }
  0xac   : > { %732 = vmatmul.bf16.vlgmr.msra.gmra.mxu1 %v2001_v13  ;;  %722 = vmatmul.bf16.vlgmr.msra.gmra.mxu0 %v1985_v14 }
  0xad   : > { %763 = vmatpush.bf16.msrb.mxu1 %v2246_v10  ;;  %742 = vmatmul.bf16.vlgmr.msra.gmra.mxu2 %v2017_v36 }
  0xae   : > { %752 = vmatmul.bf16.vlgmr.msra.gmra.mxu3 %v2033_v48 }
  0xb1   : > { %764 = vmatpush.bf16.msrb.mxu1 %v2245_v15 }
  0xb5   : > { %765 = vmatpush.bf16.msrb.mxu1 %v2244_v16 }
  0xb9   : > { %766 = vmatpush.bf16.msrb.mxu1 %v2243_v17 }
  0xbc   : > { %737 = vmatmul.bf16.gmra.mxu1 %v2009_v23  ;;  %727 = vmatmul.bf16.gmra.mxu0 %v1993_v24 }
  0xbd   : > { %767 = vmatpush.bf16.msrb.mxu1 %v2242_v22  ;;  %747 = vmatmul.bf16.gmra.mxu2 %v2025_v42 }
  0xbe   : > { %757 = vmatmul.bf16.gmra.mxu3 %v2041_v54  ;;  %v2383_v54 = vpop.eup %2382 }
  0xbf   : > { %v834_v59 = vmul.f32 128.0, %v2383_v54  ;;  %vm838_vm0 = vweird.f32 %v2383_v54 }
  0xc1   : > { %768 = vmatpush.bf16.msrb.mxu1 %v2241_v25 }
  0xc5   : > { %769 = vmatpush.bf16.msrb.mxu1 %v2240_v26 }
  0xc9   : > { %770 = vmatpush.bf16.msrb.mxu1 %v2239_v27 }
  0xcc   : > { %771 = vmatmul.bf16.vlgmr.msrb.gmra.mxu1 %v1989_v30 }
  0xdc   : > { %776 = vmatmul.bf16.gmra.mxu1 %v1997_v33 }
  0xec   : > { %781 = vmatmul.bf16.gmra.mxu1 %v2005_v39 }
  0xfc   : > { %786 = vmatmul.bf16.gmra.mxu1 %v2013_v45 }
 0x10c   : > { %791 = vmatmul.bf16.gmra.mxu1 %v2021_v51 }
 0x11c   : > { %796 = vmatmul.bf16.gmra.mxu1 %v2029_v57 }
 0x129   : > { %v733_v61 = vpop.f32.mrf.mxu1  ;;  %v723_v4 = vpop.f32.mrf.mxu0 }
 0x12c   : > { %801 = vmatmul.bf16.gmra.mxu1 %v2037_v60 }
 0x130   : > { %v743_v33 = vpop.f32.mrf.mxu2 }
 0x131   : > { %v735_v62 = vpop.f32.mrf.mxu1  ;;  %v725_v6 = vpop.f32.mrf.mxu0 }
 0x132   : > { %v753_v37 = vpop.f32.mrf.mxu3 }
 0x138   : > { %v745_v35 = vpop.f32.mrf.mxu2 }
 0x139   : > { %v738_v2 = vpop.f32.mrf.mxu1  ;;  %v728_v11 = vpop.f32.mrf.mxu0 }
 0x13a   : > { %v755_v40 = vpop.f32.mrf.mxu3 }
 0x13c   : > { %806 = vmatmul.bf16.gmra.mxu1 %v2045_v1  ;;  %v835_v1 = vsub.f32 1.0, %v834_v59  ;;  %v2252_v59 = vld [vmem:[%s2949_s16 + $0x54] sm:$0xf0] }
 0x140   : > { %v748_v39 = vpop.f32.mrf.mxu2 }
 0x141   : > { %v740_v3 = vpop.f32.mrf.mxu1  ;;  %v730_v15 = vpop.f32.mrf.mxu0 }
 0x142   : > { %v758_v48 = vpop.f32.mrf.mxu3 }
 0x148   : > { %v750_v44 = vpop.f32.mrf.mxu2 }
 0x149   : > { %v772_v5 = vpop.f32.mrf.mxu1 }
 0x14a   : > { %v2983_v8 = vadd.f32 %v772_v5, %v723_v4  ;;  %v836_v4 = vmul.f32 %v2383_v54, %v835_v1 }
 0x151   : > { %v774_v7 = vpop.f32.mrf.mxu1 }
 0x152   : > { %v2985_v9 = vadd.f32 %v774_v7, %v725_v6  ;;  %v837_v7 = vadd.f32 %v2383_v54, %v836_v4 }
 0x154   : > { %v812_v10 = vadd.f32 %v2985_v9, %v2983_v8 }
 0x159   : > { %v777_v12 = vpop.f32.mrf.mxu1 }
 0x15a   : > { %v2989_v13 = vadd.f32 %v777_v12, %v728_v11  ;;  %v3004_v12 = vsel %vm838_vm0, %v2383_v54, %v837_v7 }
 0x15c   : > { %v813_v14 = vadd.f32 %v812_v10, %v2989_v13 }
 0x161   : > { %v779_v16 = vpop.f32.mrf.mxu1 }
 0x162   : > { %v2992_v17 = vadd.f32 %v779_v16, %v730_v15 }
 0x164   : > { %v814_v18 = vadd.f32 %v813_v14, %v2992_v17 }
 0x169   : > { %v782_v19 = vpop.f32.mrf.mxu1 }
 0x16a   : > { %v2995_v20 = vadd.f32 %v782_v19, %v733_v61  ;;  %v760_v61 = vpop.f32.mrf.mxu3 }
 0x16c   : > { %v815_v21 = vadd.f32 %v814_v18, %v2995_v20 }
 0x171   : > { %v784_v22 = vpop.f32.mrf.mxu1 }
 0x172   : > { %v785_v23 = vadd.f32 %v784_v22, %v735_v62 }
 0x174   : > { %v816_v24 = vadd.f32 %v815_v21, %v785_v23 }
 0x179   : > { %v787_v25 = vpop.f32.mrf.mxu1 }
 0x17a   : > { %v788_v26 = vadd.f32 %v787_v25, %v738_v2 }
 0x17c   : > { %v817_v27 = vadd.f32 %v816_v24, %v788_v26 }
 0x181   : > { %v789_v28 = vpop.f32.mrf.mxu1 }
 0x182   : > { %v790_v29 = vadd.f32 %v789_v28, %v740_v3 }
 0x184   : > { %v818_v30 = vadd.f32 %v817_v27, %v790_v29 }
 0x189   : > { %v792_v31 = vpop.f32.mrf.mxu1 }
 0x18a   : > { %v793_v42 = vadd.f32 %v792_v31, %v743_v33 }
 0x18c   : > { %v819_v45 = vadd.f32 %v818_v30, %v793_v42 }
 0x191   : > { %v794_v32 = vpop.f32.mrf.mxu1 }
 0x192   : > { %v795_v43 = vadd.f32 %v794_v32, %v745_v35 }
 0x194   : > { %v820_v49 = vadd.f32 %v819_v45, %v795_v43 }
 0x199   : > { %v797_v34 = vpop.f32.mrf.mxu1 }
 0x19a   : > { %v798_v46 = vadd.f32 %v797_v34, %v748_v39 }
 0x19c   : > { %v821_v52 = vadd.f32 %v820_v49, %v798_v46 }
 0x1a1   : > { %v799_v36 = vpop.f32.mrf.mxu1 }
 0x1a2   : > { %v800_v50 = vadd.f32 %v799_v36, %v750_v44 }
 0x1a4   : > { %v822_v55 = vadd.f32 %v821_v52, %v800_v50 }
 0x1a9   : > { %v802_v38 = vpop.f32.mrf.mxu1 }
 0x1aa   : > { %v803_v53 = vadd.f32 %v802_v38, %v753_v37  ;;  %v2140_v37 = vld [vmem:[%s2949_s16 + $0x70] sm:$0xf]  ;;  %v2254_v38 = vld [vmem:[%s2949_s16 + $0x74] sm:$0xf0] }
 0x1ac   : > { %v823_v57 = vadd.f32 %v822_v55, %v803_v53 }
 0x1b1   : > { %v804_v41 = vpop.f32.mrf.mxu1 }
 0x1b2   : > { %v805_v56 = vadd.f32 %v804_v41, %v755_v40 }
 0x1b4   : > { %v824_v60 = vadd.f32 %v823_v57, %v805_v56  ;;  %v2132_v57 = vld [vmem:[%s2949_s16 + $0x50] sm:$0xf] }
 0x1b9   : > { %v807_v51 = vpop.f32.mrf.mxu1 }
 0x1ba   : > { %v2998_v58 = vadd.f32 %v807_v51, %v758_v48  ;;  %v2253_v48 = vld [vmem:[%s2949_s16 + $0x64] sm:$0xf0] }
 0x1bb   : > { %v2137_v52 = vor.u32 %v2253_v48, %v2136_v47  ;;  %v3092_v47 = vld [vmem:[%s2951_s22] sm:$0xff] }
 0x1bc   : > { %v825_v63 = vadd.f32 %v824_v60, %v2998_v58 }
 0x1c1   : > { %v809_v62 = vpop.f32.mrf.mxu1 }
 0x1c2   : > { %v3001_v0 = vadd.f32 %v809_v62, %v760_v61  ;;  %v2133_v62 = vor.u32 %v2252_v59, %v2132_v57 }
 0x1c4   : > { %v826_v2 = vadd.f32 %v825_v63, %v3001_v0 }
 0x1c6   : > { %v827_v3 = vrot.slane %v826_v2, 4 }
 0x1c8   : > { %v828_v5 = vadd.f32 %v827_v3, %v826_v2  ;;  %v2128_v2 = vld [vmem:[%s2949_s16 + $0x40] sm:$0xf]  ;;  %v2251_v3 = vld [vmem:[%s2949_s16 + $0x44] sm:$0xf0] }
 0x1ca   : > { %v829_v6 = vrot.slane %v828_v5, 2 }
 0x1cc   : > { %v830_v10 = vadd.f32 %v829_v6, %v828_v5  ;;  %v2129_v5 = vor.u32 %v2251_v3, %v2128_v2 }
 0x1ce   : > { %v831_v11 = vrot.slane %v830_v10, 1 }
 0x1d0   : > { %v832_v14 = vadd.f32 %v831_v11, %v830_v10  ;;  %v2250_v10 = vld [vmem:[%s2949_s16 + $0x34] sm:$0xf0] }
 0x1d2   : > { %v840_v15 = vmul.f32 %v3004_v12, %v832_v14 }
 0x1d4   : > { %v3008_v16 = vsub.f32 %v2983_v8, %v840_v15  ;;  %v3011_v18 = vsub.f32 %v2985_v9, %v840_v15  ;;  %v3014_v19 = vsub.f32 %v2989_v13, %v840_v15  ;;  %v3017_v21 = vsub.f32 %v2992_v17, %v840_v15 }
 0x1d5   : > { %v3020_v22 = vsub.f32 %v2995_v20, %v840_v15  ;;  %v3022_v24 = vsub.f32 %v785_v23, %v840_v15  ;;  %v3024_v25 = vsub.f32 %v788_v26, %v840_v15  ;;  %v3026_v27 = vsub.f32 %v790_v29, %v840_v15 }
 0x1d6   : > { %v857_v8 = vmul.f32 %v3008_v16, %v3008_v16  ;;  %v858_v9 = vmul.f32 %v3011_v18, %v3011_v18  ;;  %v859_v13 = vmul.f32 %v3014_v19, %v3014_v19  ;;  %v860_v20 = vmul.f32 %v3017_v21, %v3017_v21 }
 0x1d7   : > { %v861_v26 = vmul.f32 %v3020_v22, %v3020_v22  ;;  %v862_v29 = vmul.f32 %v3022_v24, %v3022_v24  ;;  %v3040_v31 = vsub.f32 %v793_v42, %v840_v15  ;;  %v863_v32 = vmul.f32 %v3024_v25, %v3024_v25 }
 0x1d8   : > { %v873_v17 = vadd.f32 %v858_v9, %v857_v8  ;;  %v3044_v34 = vsub.f32 %v795_v43, %v840_v15  ;;  %v864_v35 = vmul.f32 %v3026_v27, %v3026_v27  ;;  %v3050_v39 = vsub.f32 %v798_v46, %v840_v15  ;;  %v2120_v8 = vld [vmem:[%s2949_s16 + $0x20] sm:$0xf]  ;;  %v2249_v9 = vld [vmem:[%s2949_s16 + $0x24] sm:$0xf0] }
 0x1d9   : > { %v865_v40 = vmul.f32 %v3040_v31, %v3040_v31  ;;  %v2141_v42 = vor.u32 %v2254_v38, %v2140_v37  ;;  %v3054_v44 = vsub.f32 %v800_v50, %v840_v15  ;;  %v3060_v49 = vsub.f32 %v803_v53, %v840_v15 }
 0x1da   : > { %v874_v23 = vadd.f32 %v873_v17, %v859_v13  ;;  %v866_v43 = vmul.f32 %v3044_v34, %v3044_v34  ;;  %v867_v46 = vmul.f32 %v3050_v39, %v3050_v39  ;;  %v3064_v54 = vsub.f32 %v805_v56, %v840_v15 }
 0x1db   : > { %1029 = vmatpush.bf16.msrb.mxu2 %v2141_v42  ;;  %v868_v50 = vmul.f32 %v3054_v44, %v3054_v44  ;;  %v3071_v60 = vsub.f32 %v2998_v58, %v840_v15  ;;  %v869_v53 = vmul.f32 %v3060_v49, %v3060_v49  ;;  %v856_v56 = vsub.f32 %v3001_v0, %v840_v15  ;;  %v2124_v0 = vld [vmem:[%s2949_s16 + $0x30] sm:$0xf] }
 0x1dc   : > { %v875_v28 = vadd.f32 %v874_v23, %v860_v20  ;;  %v870_v63 = vmul.f32 %v3064_v54, %v3064_v54  ;;  %v2125_v14 = vor.u32 %v2250_v10, %v2124_v0  ;;  %v2121_v17 = vor.u32 %v2249_v9, %v2120_v8  ;;  %v2116_v23 = vld [vmem:[%s2949_s16 + $0x10] sm:$0xf] }
 0x1dd   : > { %v871_v58 = vmul.f32 %v3071_v60, %v3071_v60  ;;  %v872_v6 = vmul.f32 %v856_v56, %v856_v56 }
 0x1de   : > { %v876_v30 = vadd.f32 %v875_v28, %v861_v26  ;;  %v2248_v26 = vld [vmem:[%s2949_s16 + $0x14] sm:$0xf0] }
 0x1df   : > { %1030 = vmatpush.bf16.msrb.mxu2 %v2137_v52 }
 0x1e0   : > { %v877_v33 = vadd.f32 %v876_v30, %v862_v29  ;;  %v2112_v29 = vld [vmem:[%s2949_s16] sm:$0xf]  ;;  %v2117_v30 = vor.u32 %v2248_v26, %v2116_v23 }
 0x1e2   : > { %v878_v36 = vadd.f32 %v877_v33, %v863_v32  ;;  %v2247_v32 = vld [vmem:[%s2949_s16 + $0x4] sm:$0xf0] }
 0x1e3   : > { %1031 = vmatpush.bf16.msrb.mxu2 %v2133_v62 }
 0x1e4   : > { %v879_v41 = vadd.f32 %v878_v36, %v864_v35  ;;  %v2113_v35 = vor.u32 %v2247_v32, %v2112_v29 }
 0x1e6   : > { %v880_v45 = vadd.f32 %v879_v41, %v865_v40 }
 0x1e7   : > { %1032 = vmatpush.bf16.msrb.mxu2 %v2129_v5 }
 0x1e8   : > { %v881_v51 = vadd.f32 %v880_v45, %v866_v43 }
 0x1ea   : > { %v882_v55 = vadd.f32 %v881_v51, %v867_v46 }
 0x1eb   : > { %1033 = vmatpush.bf16.msrb.mxu2 %v2125_v14 }
 0x1ec   : > { %v883_v61 = vadd.f32 %v882_v55, %v868_v50  ;;  %v924_v50 = vperm.slane %v3092_v47, 1 }
 0x1ee   : > { %v884_v1 = vadd.f32 %v883_v61, %v869_v53 }
 0x1ef   : > { %1034 = vmatpush.bf16.msrb.mxu2 %v2121_v17 }
 0x1f0   : > { %v885_v4 = vadd.f32 %v884_v1, %v870_v63 }
 0x1f2   : > { %v886_v7 = vadd.f32 %v885_v4, %v871_v58 }
 0x1f3   : > { %1035 = vmatpush.bf16.msrb.mxu2 %v2117_v30 }
 0x1f4   : > { %v887_v11 = vadd.f32 %v886_v7, %v872_v6 }
 0x1f6   : > { %v888_v15 = vrot.slane %v887_v11, 4 }
 0x1f7   : > { %1036 = vmatpush.bf16.msrb.mxu2 %v2113_v35 }
 0x1f8   : > { %v889_v13 = vadd.f32 %v888_v15, %v887_v11 }
 0x1fa   : > { %v890_v20 = vrot.slane %v889_v13, 2 }
 0x1fc   : > { %v891_v28 = vadd.f32 %v890_v20, %v889_v13 }
 0x1fe   : > { %v892_v33 = vrot.slane %v891_v28, 1 }
 0x200   : > { %v893_v36 = vadd.f32 %v892_v33, %v891_v28 }
 0x202   : > { %v894_v37 = vmul.f32 %v893_v36, %v3004_v12 }
 0x204   : > { %v895_v38 = vadd.f32 1e-05, %v894_v37 }
 0x206   : > { %2384 = vrsqrt.f32 %v895_v38  ;;  %vm902_vm2 = vweird.f32 %v895_v38 }
 0x20c   : > { %v2385_v40 = vpop.eup %2384 }
 0x20d   : > { %v897_v41 = vmul.f32 %v2385_v40, %v895_v38  ;;  %vm903_vm1 = vweird.f32 %v2385_v40 }
 0x20e   : > { %vm904_vm3 = vmor %vm902_vm2, %vm903_vm1 }
 0x20f   : > { %v898_v42 = vmul.f32 %v2385_v40, %v897_v41 }
 0x211   : > { %v899_v43 = vmul.f32 0.5, %v898_v42 }
 0x213   : > { %v900_v45 = vsub.f32 1.5, %v899_v43 }
 0x215   : > { %v901_v48 = vmul.f32 %v2385_v40, %v900_v45 }
 0x217   : > { %v905_v46 = vsel %vm904_vm3, %v2385_v40, %v901_v48 }
 0x218   : > { %v906_v51 = vmul.f32 %v905_v46, %v3092_v47 }
 0x21a   : > { %v907_v52 = vperm.slane %v906_v51, 0 }
 0x21c   : > { %v908_v55 = vmul.f32 %v907_v52, %v3008_v16  ;;  %v909_v57 = vmul.f32 %v907_v52, %v3011_v18  ;;  %v923_v63 = vmul.f32 %v907_v52, %v856_v56  ;;  %v916_v2 = vmul.f32 %v907_v52, %v3040_v31 }
 0x21d   : > { %v917_v3 = vmul.f32 %v907_v52, %v3044_v34  ;;  %v910_v58 = vmul.f32 %v907_v52, %v3014_v19  ;;  %v918_v4 = vmul.f32 %v907_v52, %v3050_v39  ;;  %v919_v5 = vmul.f32 %v907_v52, %v3054_v44 }
 0x21e   : > { %v925_v59 = vadd.f32 %v924_v50, %v908_v55  ;;  %v926_v53 = vadd.f32 %v924_v50, %v909_v57  ;;  %v911_v16 = vmul.f32 %v907_v52, %v3017_v21  ;;  %v933_v18 = vadd.f32 %v924_v50, %v916_v2 }
 0x21f   : > { %v934_v6 = vadd.f32 %v924_v50, %v917_v3  ;;  %v920_v7 = vmul.f32 %v907_v52, %v3060_v49  ;;  %v935_v0 = vadd.f32 %v924_v50, %v918_v4  ;;  %v936_v56 = vadd.f32 %v924_v50, %v919_v5 }
 0x220   : > { %v941_v61 = vmax.f32 %v925_v59, 0.0  ;;  %v942_v62 = vmax.f32 %v926_v53, 0.0  ;;  %v921_v10 = vmul.f32 %v907_v52, %v3064_v54  ;;  %v922_v31 = vmul.f32 %v907_v52, %v3071_v60 }
 0x221   : > { %v949_v34 = vmax.f32 %v933_v18, 0.0  ;;  %v950_v11 = vmax.f32 %v934_v6, 0.0  ;;  %v937_v19 = vadd.f32 %v924_v50, %v920_v7  ;;  %v940_v14 = vadd.f32 %v924_v50, %v923_v63 }
 0x222   : > { %v973_v1 = vpack.c.bf16 %v942_v62, %v941_v61  ;;  %v951_v39 = vmax.f32 %v935_v0, 0.0  ;;  %v952_v15 = vmax.f32 %v936_v56, 0.0  ;;  %v938_v44 = vadd.f32 %v924_v50, %v921_v10 }
 0x223   : > { %v939_v8 = vadd.f32 %v924_v50, %v922_v31  ;;  %v977_v9 = vpack.c.bf16 %v950_v11, %v949_v34  ;;  %v953_v21 = vmax.f32 %v937_v19, 0.0  ;;  %v956_v13 = vmax.f32 %v940_v14, 0.0 }
 0x224   : > { %1037 = vmatmul.bf16.vlgmr.msrb.gmra.mxu2 %v973_v1  ;;  %v978_v17 = vpack.c.bf16 %v952_v15, %v951_v39  ;;  %v954_v20 = vmax.f32 %v938_v44, 0.0  ;;  %v927_v23 = vadd.f32 %v924_v50, %v910_v58  ;;  %v928_v26 = vadd.f32 %v924_v50, %v911_v16 }
 0x225   : > { %v955_v49 = vmax.f32 %v939_v8, 0.0  ;;  %v912_v32 = vmul.f32 %v907_v52, %v3020_v22  ;;  %v913_v33 = vmul.f32 %v907_v52, %v3022_v24  ;;  %v914_v41 = vmul.f32 %v907_v52, %v3024_v25 }
 0x226   : > { %v979_v28 = vpack.c.bf16 %v954_v20, %v953_v21  ;;  %v943_v29 = vmax.f32 %v927_v23, 0.0  ;;  %v944_v60 = vmax.f32 %v928_v26, 0.0  ;;  %v915_v42 = vmul.f32 %v907_v52, %v3026_v27 }
 0x227   : > { %v980_v54 = vpack.c.bf16 %v956_v13, %v955_v49  ;;  %v929_v35 = vadd.f32 %v924_v50, %v912_v32  ;;  %v930_v36 = vadd.f32 %v924_v50, %v913_v33  ;;  %v931_v43 = vadd.f32 %v924_v50, %v914_v41 }
 0x228   : > { %v974_v30 = vpack.c.bf16 %v944_v60, %v943_v29  ;;  %v932_v45 = vadd.f32 %v924_v50, %v915_v42 }
 0x229   : > { %v945_v37 = vmax.f32 %v929_v35, 0.0  ;;  %v946_v38 = vmax.f32 %v930_v36, 0.0  ;;  %v947_v48 = vmax.f32 %v931_v43, 0.0 }
 0x22a   : > { %v948_v46 = vmax.f32 %v932_v45, 0.0 }
 0x22b   : > { %v975_v40 = vpack.c.bf16 %v946_v38, %v945_v37 }
 0x22c   : > { %v976_v51 = vpack.c.bf16 %v948_v46, %v947_v48 }
 0x234   : > { %1042 = vmatmul.bf16.gmra.mxu2 %v974_v30 }
 0x244   : > { %1047 = vmatmul.bf16.gmra.mxu2 %v975_v40 }
 0x254   : > { %1052 = vmatmul.bf16.gmra.mxu2 %v976_v51 }
 0x264   : > { %1057 = vmatmul.bf16.gmra.mxu2 %v977_v9 }
 0x274   : > { %1062 = vmatmul.bf16.gmra.mxu2 %v978_v17 }
 0x284   : > { %1067 = vmatmul.bf16.gmra.mxu2 %v979_v28 }
 0x294   : > { %1072 = vmatmul.bf16.gmra.mxu2 %v980_v54 }
 0x2a7   : > { %v1038_v22 = vpop.f32.mrf.mxu2 }
 0x2af   : > { %v1040_v24 = vpop.f32.mrf.mxu2 }
 0x2b0   : > { %v1078_v63 = vadd.f32 %v1040_v24, %v1038_v22 }
 0x2b7   : > { %v1043_v55 = vpop.f32.mrf.mxu2 }
 0x2b8   : > { %v1079_v1 = vadd.f32 %v1078_v63, %v1043_v55 }
 0x2bf   : > { %v1045_v57 = vpop.f32.mrf.mxu2 }
 0x2c0   : > { %v1080_v3 = vadd.f32 %v1079_v1, %v1045_v57 }
 0x2c7   : > { %v1048_v59 = vpop.f32.mrf.mxu2 }
 0x2c8   : > { %v1081_v58 = vadd.f32 %v1080_v3, %v1048_v59 }
 0x2cf   : > { %v1050_v53 = vpop.f32.mrf.mxu2 }
 0x2d0   : > { %v1082_v4 = vadd.f32 %v1081_v58, %v1050_v53  ;;  %v2168_v58 = vld [vmem:[%s2949_s16 + $0x64] sm:$0xf] }
 0x2d7   : > { %v1053_v61 = vpop.f32.mrf.mxu2 }
 0x2d8   : > { %v1083_v5 = vadd.f32 %v1082_v4, %v1053_v61  ;;  %v2261_v4 = vld [vmem:[%s2949_s16 + $0x68] sm:$0xf0] }
 0x2df   : > { %v1055_v25 = vpop.f32.mrf.mxu2 }
 0x2e0   : > { %v1084_v18 = vadd.f32 %v1083_v5, %v1055_v25 }
 0x2e7   : > { %v1058_v62 = vpop.f32.mrf.mxu2 }
 0x2e8   : > { %v1085_v6 = vadd.f32 %v1084_v18, %v1058_v62 }
 0x2ef   : > { %v1060_v27 = vpop.f32.mrf.mxu2 }
 0x2f0   : > { %v1086_v7 = vadd.f32 %v1085_v6, %v1060_v27  ;;  %v2169_v6 = vor.u32 %v2261_v4, %v2168_v58  ;;  %v1183_v58 = vperm.slane %v3092_v47, 3 }
 0x2f7   : > { %v1063_v52 = vpop.f32.mrf.mxu2 }
 0x2f8   : > { %v1087_v0 = vadd.f32 %v1086_v7, %v1063_v52 }
 0x2ff   : > { %v1065_v50 = vpop.f32.mrf.mxu2 }
 0x300   : > { %v1088_v10 = vadd.f32 %v1087_v0, %v1065_v50 }
 0x307   : > { %v1068_v2 = vpop.f32.mrf.mxu2 }
 0x308   : > { %v1089_v31 = vadd.f32 %v1088_v10, %v1068_v2  ;;  %v2164_v10 = vld [vmem:[%s2949_s16 + $0x54] sm:$0xf] }
 0x30f   : > { %v1070_v16 = vpop.f32.mrf.mxu2 }
 0x310   : > { %v1090_v34 = vadd.f32 %v1089_v31, %v1070_v16  ;;  %v2260_v31 = vld [vmem:[%s2949_s16 + $0x58] sm:$0xf0] }
 0x317   : > { %v1073_v56 = vpop.f32.mrf.mxu2 }
 0x318   : > { %v1091_v11 = vadd.f32 %v1090_v34, %v1073_v56 }
 0x31f   : > { %v1075_v19 = vpop.f32.mrf.mxu2 }
 0x320   : > { %v1092_v14 = vadd.f32 %v1091_v11, %v1075_v19  ;;  %v2165_v11 = vor.u32 %v2260_v31, %v2164_v10 }
 0x322   : > { %v1093_v39 = vrot.slane %v1092_v14, 4 }
 0x324   : > { %v1094_v15 = vadd.f32 %v1093_v39, %v1092_v14 }
 0x326   : > { %v1095_v44 = vrot.slane %v1094_v15, 2 }
 0x328   : > { %v1096_v8 = vadd.f32 %v1095_v44, %v1094_v15  ;;  %v2259_v15 = vld [vmem:[%s2949_s16 + $0x48] sm:$0xf0] }
 0x32a   : > { %v1097_v9 = vrot.slane %v1096_v8, 1 }
 0x32c   : > { %v1098_v21 = vadd.f32 %v1097_v9, %v1096_v8 }
 0x32e   : > { %v1099_v13 = vmul.f32 %v1098_v21, %v3004_v12  ;;  %v2156_v21 = vld [vmem:[%s2949_s16 + $0x34] sm:$0xf] }
 0x330   : > { %v3112_v17 = vsub.f32 %v1038_v22, %v1099_v13  ;;  %v3114_v20 = vsub.f32 %v1040_v24, %v1099_v13  ;;  %v3116_v49 = vsub.f32 %v1043_v55, %v1099_v13  ;;  %v3122_v28 = vsub.f32 %v1045_v57, %v1099_v13 }
 0x331   : > { %v3124_v54 = vsub.f32 %v1048_v59, %v1099_v13  ;;  %v3128_v30 = vsub.f32 %v1050_v53, %v1099_v13  ;;  %v3132_v35 = vsub.f32 %v1053_v61, %v1099_v13  ;;  %v3136_v38 = vsub.f32 %v1055_v25, %v1099_v13  ;;  %v2172_v61 = vld [vmem:[%s2949_s16 + $0x74] sm:$0xf]  ;;  %v2262_v25 = vld [vmem:[%s2949_s16 + $0x78] sm:$0xf0] }
 0x332   : > { %v1116_v23 = vmul.f32 %v3112_v17, %v3112_v17  ;;  %v1117_v26 = vmul.f32 %v3114_v20, %v3114_v20  ;;  %v1118_v29 = vmul.f32 %v3116_v49, %v3116_v49  ;;  %v1119_v32 = vmul.f32 %v3122_v28, %v3122_v28 }
 0x333   : > { %v1120_v36 = vmul.f32 %v3124_v54, %v3124_v54  ;;  %v1121_v40 = vmul.f32 %v3128_v30, %v3128_v30  ;;  %v3140_v42 = vsub.f32 %v1058_v62, %v1099_v13  ;;  %v1122_v43 = vmul.f32 %v3132_v35, %v3132_v35 }
 0x334   : > { %v1132_v60 = vadd.f32 %v1117_v26, %v1116_v23  ;;  %v3144_v48 = vsub.f32 %v1060_v27, %v1099_v13  ;;  %v1123_v46 = vmul.f32 %v3136_v38, %v3136_v38  ;;  %v3148_v22 = vsub.f32 %v1063_v52, %v1099_v13 }
 0x335   : > { %v1124_v24 = vmul.f32 %v3140_v42, %v3140_v42  ;;  %v3152_v57 = vsub.f32 %v1065_v50, %v1099_v13  ;;  %v3158_v62 = vsub.f32 %v1068_v2, %v1099_v13  ;;  %v2173_v63 = vor.u32 %v2262_v25, %v2172_v61 }
 0x336   : > { %v1133_v33 = vadd.f32 %v1132_v60, %v1118_v29  ;;  %v1125_v59 = vmul.f32 %v3144_v48, %v3144_v48  ;;  %v1126_v27 = vmul.f32 %v3148_v22, %v3148_v22  ;;  %v3162_v1 = vsub.f32 %v1070_v16, %v1099_v13  ;;  %v2152_v60 = vld [vmem:[%s2949_s16 + $0x24] sm:$0xf] }
 0x337   : > { %v1127_v50 = vmul.f32 %v3152_v57, %v3152_v57  ;;  %1288 = vmatpush.bf16.msrb.mxu3 %v2173_v63  ;;  %v3168_v5 = vsub.f32 %v1073_v56, %v1099_v13  ;;  %v1128_v2 = vmul.f32 %v3158_v62, %v3158_v62  ;;  %v1115_v7 = vsub.f32 %v1075_v19, %v1099_v13  ;;  %v2160_v19 = vld [vmem:[%s2949_s16 + $0x44] sm:$0xf]  ;;  %v2258_v13 = vld [vmem:[%s2949_s16 + $0x38] sm:$0xf0] }
 0x338   : > { %v1134_v37 = vadd.f32 %v1133_v33, %v1119_v32  ;;  %v1129_v16 = vmul.f32 %v3162_v1, %v3162_v1  ;;  %v2161_v8 = vor.u32 %v2259_v15, %v2160_v19  ;;  %v2157_v26 = vor.u32 %v2258_v13, %v2156_v21  ;;  %v2257_v32 = vld [vmem:[%s2949_s16 + $0x28] sm:$0xf0] }
 0x339   : > { %v1130_v56 = vmul.f32 %v3168_v5, %v3168_v5  ;;  %v1131_v14 = vmul.f32 %v1115_v7, %v1115_v7 }
 0x33a   : > { %v1135_v41 = vadd.f32 %v1134_v37, %v1120_v36  ;;  %v2153_v36 = vor.u32 %v2257_v32, %v2152_v60  ;;  %v2148_v37 = vld [vmem:[%s2949_s16 + $0x14] sm:$0xf] }
 0x33b   : > { %1289 = vmatpush.bf16.msrb.mxu3 %v2169_v6 }
 0x33c   : > { %v1136_v45 = vadd.f32 %v1135_v41, %v1121_v40  ;;  %v2256_v40 = vld [vmem:[%s2949_s16 + $0x18] sm:$0xf0] }
 0x33e   : > { %v1137_v51 = vadd.f32 %v1136_v45, %v1122_v43  ;;  %v2149_v43 = vor.u32 %v2256_v40, %v2148_v37  ;;  %v2144_v45 = vld [vmem:[%s2949_s16 + $0x4] sm:$0xf] }
 0x33f   : > { %1290 = vmatpush.bf16.msrb.mxu3 %v2165_v11 }
 0x340   : > { %v1138_v55 = vadd.f32 %v1137_v51, %v1123_v46  ;;  %v2255_v46 = vld [vmem:[%s2949_s16 + $0x8] sm:$0xf0]  ;;  %s1775_s16 = sshll.u32 %s1772_s17, 4  ;;  %s1776_s16 = int_to_ptr.hbm [resolvable:$true] %s1775_s16 }
 0x341   : > { %s2616_s22 = sshra.s32 %s1776_s16, 4  ;;  %s2617_s22 = int_to_ptr.hbm [resolvable:$true] %s2616_s22 }
 0x342   : > { %v1139_v53 = vadd.f32 %v1138_v55, %v1124_v24  ;;  %v2145_v55 = vor.u32 %v2255_v46, %v2144_v45  ;;  %s2618_s1 = scalar_lea.hbm %s2617_s22, 256  ;;  %p2623_p11 = scmp.lt.s32.totalorder %s2617_s22, %s3548_s29 }
 0x343   : > { %1291 = vmatpush.bf16.msrb.mxu3 %v2161_v8  ;;  %p2619_p8 = scmp.ne.s32.totalorder %s2617_s22, %s2618_s1  ;;  %p2624_p3 = scmp.lt.s32.totalorder %s2622_s20, %s2618_s1 }
 0x344   : > { %v1140_v52 = vadd.f32 %v1139_v53, %v1125_v59 }
 0x345   : > { %p2620_p13 = pnand %p2619_p8, %p2851_p7  ;;  %p2625_p1 = por %p2624_p3, %p2623_p11 }
 0x346   : > { %v1141_v3 = vadd.f32 %v1140_v52, %v1126_v27 }
 0x347   : > { %1292 = vmatpush.bf16.msrb.mxu3 %v2157_v26  ;;  %p2621_p5 = pneg %p2620_p13 }
 0x348   : > { %v1142_v18 = vadd.f32 %v1141_v3, %v1127_v50 }
 0x349   : > { %p2626_p2 = pnand %p2625_p1, %p2621_p5 }
 0x34a   : > { %v1143_v0 = vadd.f32 %v1142_v18, %v1128_v2 }
 0x34b   : > { %1293 = vmatpush.bf16.msrb.mxu3 %v2153_v36 }
 0x34c   : > { %v1144_v34 = vadd.f32 %v1143_v0, %v1129_v16 }
 0x34e   : > { %v1145_v39 = vadd.f32 %v1144_v34, %v1130_v56 }
 0x34f   : > { %1294 = vmatpush.bf16.msrb.mxu3 %v2149_v43 }
 0x350   : > { %v1146_v44 = vadd.f32 %v1145_v39, %v1131_v14 }
 0x352   : > { %v1147_v9 = vrot.slane %v1146_v44, 4 }
 0x353   : > { %1295 = vmatpush.bf16.msrb.mxu3 %v2145_v55 }
 0x354   : > { %v1148_v23 = vadd.f32 %v1147_v9, %v1146_v44 }
 0x356   : > { %v1149_v29 = vrot.slane %v1148_v23, 2 }
 0x358   : > { %v1150_v33 = vadd.f32 %v1149_v29, %v1148_v23 }
 0x35a   : > { %v1151_v41 = vrot.slane %v1150_v33, 1 }
 0x35c   : > { %v1152_v51 = vadd.f32 %v1151_v41, %v1150_v33 }
 0x35e   : > { %v1153_v24 = vmul.f32 %v1152_v51, %v3004_v12 }
 0x360   : > { %v1154_v59 = vadd.f32 1e-05, %v1153_v24 }
 0x362   : > { %2386 = vrsqrt.f32 %v1154_v59  ;;  %vm1161_vm5 = vweird.f32 %v1154_v59 }
 0x368   : > { %v2387_v53 = vpop.eup %2386 }
 0x369   : > { %v1156_v61 = vmul.f32 %v2387_v53, %v1154_v59  ;;  %vm1162_vm4 = vweird.f32 %v2387_v53 }
 0x36a   : > { %vm1163_vm6 = vmor %vm1161_vm5, %vm1162_vm4 }
 0x36b   : > { %v1157_v25 = vmul.f32 %v2387_v53, %v1156_v61 }
 0x36d   : > { %v1158_v27 = vmul.f32 0.5, %v1157_v25 }
 0x36f   : > { %v1159_v52 = vsub.f32 1.5, %v1158_v27 }
 0x371   : > { %v1160_v63 = vmul.f32 %v2387_v53, %v1159_v52 }
 0x373   : > { %v1164_v50 = vsel %vm1163_vm6, %v2387_v53, %v1160_v63 }
 0x374   : > { %v1165_v3 = vmul.f32 %v1164_v50, %v3092_v47 }
 0x376   : > { %v1166_v4 = vperm.slane %v1165_v3, 2 }
 0x378   : > { %v1167_v2 = vmul.f32 %v1166_v4, %v3112_v17  ;;  %v1168_v18 = vmul.f32 %v1166_v4, %v3114_v20  ;;  %v1182_v31 = vmul.f32 %v1166_v4, %v1115_v7  ;;  %v1175_v34 = vmul.f32 %v1166_v4, %v3140_v42 }
 0x379   : > { %v1176_v11 = vmul.f32 %v1166_v4, %v3144_v48  ;;  %v1169_v14 = vmul.f32 %v1166_v4, %v3116_v49  ;;  %v1177_v39 = vmul.f32 %v1166_v4, %v3148_v22  ;;  %v1178_v19 = vmul.f32 %v1166_v4, %v3152_v57 }
 0x37a   : > { %v1184_v6 = vadd.f32 %v1183_v58, %v1167_v2  ;;  %v1185_v16 = vadd.f32 %v1183_v58, %v1168_v18  ;;  %v1170_v17 = vmul.f32 %v1166_v4, %v3122_v28  ;;  %v1192_v20 = vadd.f32 %v1183_v58, %v1175_v34 }
 0x37b   : > { %v1193_v15 = vadd.f32 %v1183_v58, %v1176_v11  ;;  %v1179_v44 = vmul.f32 %v1166_v4, %v3158_v62  ;;  %v1194_v8 = vadd.f32 %v1183_v58, %v1177_v39  ;;  %v1195_v7 = vadd.f32 %v1183_v58, %v1178_v19 }
 0x37c   : > { %v1200_v0 = vmax.f32 %v1184_v6, 0.0  ;;  %v1201_v10 = vmax.f32 %v1185_v16, 0.0  ;;  %v1180_v9 = vmul.f32 %v1166_v4, %v3162_v1  ;;  %v1181_v42 = vmul.f32 %v1166_v4, %v3168_v5 }
 0x37d   : > { %v1208_v48 = vmax.f32 %v1192_v20, 0.0  ;;  %v1209_v21 = vmax.f32 %v1193_v15, 0.0  ;;  %v1196_v49 = vadd.f32 %v1183_v58, %v1179_v44  ;;  %v1199_v13 = vadd.f32 %v1183_v58, %v1182_v31 }
 0x37e   : > { %v1232_v56 = vpack.c.bf16 %v1201_v10, %v1200_v0  ;;  %v1210_v22 = vmax.f32 %v1194_v8, 0.0  ;;  %v1211_v23 = vmax.f32 %v1195_v7, 0.0  ;;  %v1197_v57 = vadd.f32 %v1183_v58, %v1180_v9 }
 0x37f   : > { %v1198_v26 = vadd.f32 %v1183_v58, %v1181_v42  ;;  %v1236_v29 = vpack.c.bf16 %v1209_v21, %v1208_v48  ;;  %v1212_v28 = vmax.f32 %v1196_v49, 0.0  ;;  %v1215_v60 = vmax.f32 %v1199_v13, 0.0 }
 0x380   : > { %1296 = vmatmul.bf16.vlgmr.msrb.gmra.mxu3 %v1232_v56  ;;  %v1237_v32 = vpack.c.bf16 %v1211_v23, %v1210_v22  ;;  %v1213_v33 = vmax.f32 %v1197_v57, 0.0  ;;  %v1186_v36 = vadd.f32 %v1183_v58, %v1169_v14  ;;  %v1187_v37 = vadd.f32 %v1183_v58, %v1170_v17 }
 0x381   : > { %v1214_v62 = vmax.f32 %v1198_v26, 0.0  ;;  %v1171_v45 = vmul.f32 %v1166_v4, %v3124_v54  ;;  %v1172_v46 = vmul.f32 %v1166_v4, %v3128_v30  ;;  %v1173_v61 = vmul.f32 %v1166_v4, %v3132_v35 }
 0x382   : > { %v1238_v40 = vpack.c.bf16 %v1213_v33, %v1212_v28  ;;  %v1202_v41 = vmax.f32 %v1186_v36, 0.0  ;;  %v1203_v5 = vmax.f32 %v1187_v37, 0.0  ;;  %v1174_v25 = vmul.f32 %v1166_v4, %v3136_v38 }
 0x383   : > { %v1239_v1 = vpack.c.bf16 %v1215_v60, %v1214_v62  ;;  %v1188_v51 = vadd.f32 %v1183_v58, %v1171_v45  ;;  %v1189_v24 = vadd.f32 %v1183_v58, %v1172_v46  ;;  %v1190_v27 = vadd.f32 %v1183_v58, %v1173_v61 }
 0x384   : > { %v1233_v43 = vpack.c.bf16 %v1203_v5, %v1202_v41  ;;  %v1191_v52 = vadd.f32 %v1183_v58, %v1174_v25 }
 0x385   : > { %v1204_v55 = vmax.f32 %v1188_v51, 0.0  ;;  %v1205_v59 = vmax.f32 %v1189_v24, 0.0  ;;  %v1206_v63 = vmax.f32 %v1190_v27, 0.0 }
 0x386   : > { %v1207_v50 = vmax.f32 %v1191_v52, 0.0 }
 0x387   : > { %v1234_v53 = vpack.c.bf16 %v1205_v59, %v1204_v55 }
 0x388   : > { %v1235_v3 = vpack.c.bf16 %v1207_v50, %v1206_v63 }
 0x390   : > { %1301 = vmatmul.bf16.gmra.mxu3 %v1233_v43 }
 0x3a0   : > { %1306 = vmatmul.bf16.gmra.mxu3 %v1234_v53 }
 0x3b0   : > { %1311 = vmatmul.bf16.gmra.mxu3 %v1235_v3 }
 0x3c0   : > { %1316 = vmatmul.bf16.gmra.mxu3 %v1236_v29 }
 0x3d0   : > { %1321 = vmatmul.bf16.gmra.mxu3 %v1237_v32 }
 0x3e0   : > { %1326 = vmatmul.bf16.gmra.mxu3 %v1238_v40 }
 0x3f0   : > { %1331 = vmatmul.bf16.gmra.mxu3 %v1239_v1 }
 0x403   : > { %v1297_v54 = vpop.f32.mrf.mxu3 }
 0x40b   : > { %v1299_v30 = vpop.f32.mrf.mxu3 }
 0x40c   : > { %v1337_v31 = vadd.f32 %v1299_v30, %v1297_v54 }
 0x413   : > { %v1302_v2 = vpop.f32.mrf.mxu3 }
 0x414   : > { %v1338_v56 = vadd.f32 %v1337_v31, %v1302_v2 }
 0x41b   : > { %v1304_v18 = vpop.f32.mrf.mxu3 }
 0x41c   : > { %v1339_v11 = vadd.f32 %v1338_v56, %v1304_v18 }
 0x423   : > { %v1307_v6 = vpop.f32.mrf.mxu3 }
 0x424   : > { %v1340_v14 = vadd.f32 %v1339_v11, %v1307_v6 }
 0x42b   : > { %v1309_v16 = vpop.f32.mrf.mxu3 }
 0x42c   : > { %v1341_v39 = vadd.f32 %v1340_v14, %v1309_v16  ;;  %v2269_v14 = vld [vmem:[%s2958_s8 + $0x30] sm:$0xff] }
 0x433   : > { %v1312_v0 = vpop.f32.mrf.mxu3 }
 0x434   : > { %v1342_v19 = vadd.f32 %v1341_v39, %v1312_v0 }
 0x43b   : > { %v1314_v35 = vpop.f32.mrf.mxu3 }
 0x43c   : > { %v1343_v20 = vadd.f32 %v1342_v19, %v1314_v35 }
 0x443   : > { %v1317_v10 = vpop.f32.mrf.mxu3 }
 0x444   : > { %v1344_v15 = vadd.f32 %v1343_v20, %v1317_v10 }
 0x44b   : > { %v1319_v38 = vpop.f32.mrf.mxu3 }
 0x44c   : > { %v1345_v44 = vadd.f32 %v1344_v15, %v1319_v38 }
 0x453   : > { %v1322_v4 = vpop.f32.mrf.mxu3 }
 0x454   : > { %v1346_v8 = vadd.f32 %v1345_v44, %v1322_v4  ;;  %v2268_v44 = vld [vmem:[%s2958_s8 + $0x28] sm:$0xff] }
 0x45b   : > { %v1324_v58 = vpop.f32.mrf.mxu3 }
 0x45c   : > { %v1347_v9 = vadd.f32 %v1346_v8, %v1324_v58 }
 0x463   : > { %v1327_v34 = vpop.f32.mrf.mxu3 }
 0x464   : > { %v1348_v42 = vadd.f32 %v1347_v9, %v1327_v34 }
 0x46b   : > { %v1329_v17 = vpop.f32.mrf.mxu3 }
 0x46c   : > { %v1349_v48 = vadd.f32 %v1348_v42, %v1329_v17  ;;  %v2267_v42 = vld [vmem:[%s2958_s8 + $0x20] sm:$0xff] }
 0x473   : > { %v1332_v7 = vpop.f32.mrf.mxu3 }
 0x474   : > { %v1350_v21 = vadd.f32 %v1349_v48, %v1332_v7 }
 0x47b   : > { %v1334_v49 = vpop.f32.mrf.mxu3 }
 0x47c   : > { %v1351_v13 = vadd.f32 %v1350_v21, %v1334_v49 }
 0x47e   : > { %v1352_v22 = vrot.slane %v1351_v13, 4 }
 0x480   : > { %v1353_v23 = vadd.f32 %v1352_v22, %v1351_v13 }
 0x482   : > { %v1354_v57 = vrot.slane %v1353_v23, 2 }
 0x484   : > { %v1355_v26 = vadd.f32 %v1354_v57, %v1353_v23  ;;  %v2265_v23 = vld [vmem:[%s2958_s8 + $0x10] sm:$0xff] }
 0x486   : > { %v1356_v29 = vrot.slane %v1355_v26, 1 }
 0x488   : > { %v1357_v28 = vadd.f32 %v1356_v29, %v1355_v26  ;;  %v2264_v26 = vld [vmem:[%s2958_s8 + $0x8] sm:$0xff] }
 0x48a   : > { %v1358_v60 = vmul.f32 %v1357_v28, %v3004_v12 }
 0x48c   : > { %v3207_v32 = vsub.f32 %v1297_v54, %v1358_v60  ;;  %v3209_v33 = vsub.f32 %v1299_v30, %v1358_v60  ;;  %v3211_v62 = vsub.f32 %v1302_v2, %v1358_v60  ;;  %v3217_v40 = vsub.f32 %v1304_v18, %v1358_v60 }
 0x48d   : > { %v3219_v1 = vsub.f32 %v1307_v6, %v1358_v60  ;;  %v3223_v43 = vsub.f32 %v1309_v16, %v1358_v60  ;;  %v3227_v51 = vsub.f32 %v1312_v0, %v1358_v60  ;;  %v3231_v59 = vsub.f32 %v1314_v35, %v1358_v60 }
 0x48e   : > { %v1375_v36 = vmul.f32 %v3207_v32, %v3207_v32  ;;  %v1376_v37 = vmul.f32 %v3209_v33, %v3209_v33  ;;  %v1377_v41 = vmul.f32 %v3211_v62, %v3211_v62  ;;  %v1378_v45 = vmul.f32 %v3217_v40, %v3217_v40 }
 0x48f   : > { %v1379_v24 = vmul.f32 %v3219_v1, %v3219_v1  ;;  %v1380_v53 = vmul.f32 %v3223_v43, %v3223_v43  ;;  %v3235_v25 = vsub.f32 %v1317_v10, %v1358_v60  ;;  %v1381_v27 = vmul.f32 %v3227_v51, %v3227_v51 }
 0x490   : > { %v1391_v5 = vadd.f32 %v1376_v37, %v1375_v36  ;;  %v3239_v63 = vsub.f32 %v1319_v38, %v1358_v60  ;;  %v1382_v50 = vmul.f32 %v3231_v59, %v3231_v59  ;;  %v3243_v54 = vsub.f32 %v1322_v4, %v1358_v60  ;;  %v2270_v38 = vld [vmem:[%s2958_s8 + $0x38] sm:$0xff] }
 0x491   : > { %v1383_v30 = vmul.f32 %v3235_v25, %v3235_v25  ;;  %v3247_v18 = vsub.f32 %v1324_v58, %v1358_v60  ;;  %v3251_v0 = vsub.f32 %v1327_v34, %v1358_v60  ;;  %v3256_v4 = vsub.f32 %v1329_v17, %v1358_v60  ;;  %1551 = vmatpush.bf16.msrb.mxu0 %v2270_v38 }
 0x492   : > { %v1392_v46 = vadd.f32 %v1391_v5, %v1377_v41  ;;  %v1384_v6 = vmul.f32 %v3239_v63, %v3239_v63  ;;  %v1385_v35 = vmul.f32 %v3243_v54, %v3243_v54  ;;  %v3260_v58 = vsub.f32 %v1332_v7, %v1358_v60 }
 0x493   : > { %v1386_v31 = vmul.f32 %v3247_v18, %v3247_v18  ;;  %v1387_v34 = vmul.f32 %v3251_v0, %v3251_v0  ;;  %v1374_v39 = vsub.f32 %v1334_v49, %v1358_v60  ;;  %v1388_v19 = vmul.f32 %v3256_v4, %v3256_v4  ;;  %v2266_v49 = vld [vmem:[%s2958_s8 + $0x18] sm:$0xff]  ;;  %v2263_v60 = vld [vmem:[%s2958_s8] sm:$0xff] }
 0x494   : > { %v1393_v55 = vadd.f32 %v1392_v46, %v1378_v45  ;;  %v1389_v20 = vmul.f32 %v3260_v58, %v3260_v58 }
 0x495   : > { %1552 = vmatpush.bf16.msrb.mxu0 %v2269_v14  ;;  %v1390_v8 = vmul.f32 %v1374_v39, %v1374_v39 }
 0x496   : > { %v1394_v61 = vadd.f32 %v1393_v55, %v1379_v24 }
 0x498   : > { %v1395_v52 = vadd.f32 %v1394_v61, %v1380_v53  ;;  %v1442_v53 = vperm.slane %v3092_v47, 5 }
 0x499   : > { %1553 = vmatpush.bf16.msrb.mxu0 %v2268_v44 }
 0x49a   : > { %v1396_v3 = vadd.f32 %v1395_v52, %v1381_v27 }
 0x49c   : > { %v1397_v2 = vadd.f32 %v1396_v3, %v1382_v50 }
 0x49d   : > { %1554 = vmatpush.bf16.msrb.mxu0 %v2267_v42 }
 0x49e   : > { %v1398_v16 = vadd.f32 %v1397_v2, %v1383_v30 }
 0x4a0   : > { %v1399_v10 = vadd.f32 %v1398_v16, %v1384_v6 }
 0x4a1   : > { %1555 = vmatpush.bf16.msrb.mxu0 %v2266_v49 }
 0x4a2   : > { %v1400_v56 = vadd.f32 %v1399_v10, %v1385_v35 }
 0x4a4   : > { %v1401_v11 = vadd.f32 %v1400_v56, %v1386_v31 }
 0x4a5   : > { %1556 = vmatpush.bf16.msrb.mxu0 %v2265_v23 }
 0x4a6   : > { %v1402_v17 = vadd.f32 %v1401_v11, %v1387_v34 }
 0x4a8   : > { %v1403_v15 = vadd.f32 %v1402_v17, %v1388_v19 }
 0x4a9   : > { %1557 = vmatpush.bf16.msrb.mxu0 %v2264_v26 }
 0x4aa   : > { %v1404_v7 = vadd.f32 %v1403_v15, %v1389_v20 }
 0x4ac   : > { %v1405_v9 = vadd.f32 %v1404_v7, %v1390_v8 }
 0x4ad   : > { %1558 = vmatpush.bf16.msrb.mxu0 %v2263_v60 }
 0x4ae   : > { %v1406_v48 = vrot.slane %v1405_v9, 4 }
 0x4b0   : > { %v1407_v21 = vadd.f32 %v1406_v48, %v1405_v9 }
 0x4b2   : > { %v1408_v13 = vrot.slane %v1407_v21, 2 }
 0x4b4   : > { %v1409_v22 = vadd.f32 %v1408_v13, %v1407_v21 }
 0x4b6   : > { %v1410_v57 = vrot.slane %v1409_v22, 1 }
 0x4b8   : > { %v1411_v29 = vadd.f32 %v1410_v57, %v1409_v22 }
 0x4ba   : > { %v1412_v28 = vmul.f32 %v1411_v29, %v3004_v12 }
 0x4bc   : > { %v1413_v36 = vadd.f32 1e-05, %v1412_v28 }
 0x4be   : > { %2388 = vrsqrt.f32 %v1413_v36  ;;  %vm1420_vm8 = vweird.f32 %v1413_v36 }
 0x4c4   : > { %v2389_v37 = vpop.eup %2388 }
 0x4c5   : > { %v1415_v41 = vmul.f32 %v2389_v37, %v1413_v36  ;;  %vm1421_vm7 = vweird.f32 %v2389_v37 }
 0x4c6   : > { %vm1422_vm9 = vmor %vm1420_vm8, %vm1421_vm7 }
 0x4c7   : > { %v1416_v5 = vmul.f32 %v2389_v37, %v1415_v41 }
 0x4c9   : > { %v1417_v45 = vmul.f32 0.5, %v1416_v5 }
 0x4cb   : > { %v1418_v46 = vsub.f32 1.5, %v1417_v45 }
 0x4cd   : > { %v1419_v24 = vmul.f32 %v2389_v37, %v1418_v46 }
 0x4cf   : > { %v1423_v12 = vsel %vm1422_vm9, %v2389_v37, %v1419_v24 }
 0x4d0   : > { %v1424_v55 = vmul.f32 %v1423_v12, %v3092_v47 }
 0x4d2   : > { %v1425_v61 = vperm.slane %v1424_v55, 4 }
 0x4d4   : > { %v1426_v27 = vmul.f32 %v1425_v61, %v3207_v32  ;;  %v1427_v52 = vmul.f32 %v1425_v61, %v3209_v33  ;;  %v1441_v6 = vmul.f32 %v1425_v61, %v1374_v39  ;;  %v1434_v35 = vmul.f32 %v1425_v61, %v3235_v25 }
 0x4d5   : > { %v1435_v10 = vmul.f32 %v1425_v61, %v3239_v63  ;;  %v1428_v38 = vmul.f32 %v1425_v61, %v3211_v62  ;;  %v1436_v31 = vmul.f32 %v1425_v61, %v3243_v54  ;;  %v1437_v47 = vmul.f32 %v1425_v61, %v3247_v18 }
 0x4d6   : > { %v1443_v50 = vadd.f32 %v1442_v53, %v1426_v27  ;;  %v1444_v3 = vadd.f32 %v1442_v53, %v1427_v52  ;;  %v1429_v32 = vmul.f32 %v1425_v61, %v3217_v40  ;;  %v1451_v33 = vadd.f32 %v1442_v53, %v1434_v35 }
 0x4d7   : > { %v1452_v56 = vadd.f32 %v1442_v53, %v1435_v10  ;;  %v1438_v34 = vmul.f32 %v1425_v61, %v3251_v0  ;;  %v1453_v11 = vadd.f32 %v1442_v53, %v1436_v31  ;;  %v1454_v14 = vadd.f32 %v1442_v53, %v1437_v47 }
 0x4d8   : > { %v1459_v30 = vmax.f32 %v1443_v50, 0.0  ;;  %v1460_v2 = vmax.f32 %v1444_v3, 0.0  ;;  %v1439_v39 = vmul.f32 %v1425_v61, %v3256_v4  ;;  %v1440_v25 = vmul.f32 %v1425_v61, %v3260_v58 }
 0x4d9   : > { %v1467_v63 = vmax.f32 %v1451_v33, 0.0  ;;  %v1468_v19 = vmax.f32 %v1452_v56, 0.0  ;;  %v1455_v62 = vadd.f32 %v1442_v53, %v1438_v34  ;;  %v1458_v17 = vadd.f32 %v1442_v53, %v1441_v6 }
 0x4da   : > { %v1491_v16 = vpack.c.bf16 %v1460_v2, %v1459_v30  ;;  %v1469_v54 = vmax.f32 %v1453_v11, 0.0  ;;  %v1470_v20 = vmax.f32 %v1454_v14, 0.0  ;;  %v1456_v18 = vadd.f32 %v1442_v53, %v1439_v39 }
 0x4db   : > { %v1457_v15 = vadd.f32 %v1442_v53, %v1440_v25  ;;  %v1495_v44 = vpack.c.bf16 %v1468_v19, %v1467_v63  ;;  %v1471_v40 = vmax.f32 %v1455_v62, 0.0  ;;  %v1474_v8 = vmax.f32 %v1458_v17, 0.0 }
 0x4dc   : > { %1559 = vmatmul.bf16.vlgmr.msrb.gmra.mxu0 %v1491_v16  ;;  %v1496_v7 = vpack.c.bf16 %v1470_v20, %v1469_v54  ;;  %v1472_v9 = vmax.f32 %v1456_v18, 0.0  ;;  %v1445_v42 = vadd.f32 %v1442_v53, %v1428_v38  ;;  %v1446_v48 = vadd.f32 %v1442_v53, %v1429_v32 }
 0x4dd   : > { %v1473_v0 = vmax.f32 %v1457_v15, 0.0  ;;  %v1430_v22 = vmul.f32 %v1425_v61, %v3219_v1  ;;  %v1431_v23 = vmul.f32 %v1425_v61, %v3223_v43  ;;  %v1432_v36 = vmul.f32 %v1425_v61, %v3227_v51  ;;  %v3307_v1 = vld [vmem:[%s488_s9] ss:$0 sm:$0xff] }
 0x4de   : > { %v1497_v21 = vpack.c.bf16 %v1472_v9, %v1471_v40  ;;  %v1461_v49 = vmax.f32 %v1445_v42, 0.0  ;;  %v1462_v58 = vmax.f32 %v1446_v48, 0.0  ;;  %v1433_v37 = vmul.f32 %v1425_v61, %v3231_v59  ;;  %v1632_v40 = vld [vmem:[%s2961_s2] sm:$0xff] }
 0x4df   : > { %v1498_v4 = vpack.c.bf16 %v1474_v8, %v1473_v0  ;;  %v1447_v57 = vadd.f32 %v1442_v53, %v1430_v22  ;;  %v1448_v26 = vadd.f32 %v1442_v53, %v1431_v23  ;;  %v1449_v41 = vadd.f32 %v1442_v53, %v1432_v36  ;;  %v1633_v23 = vld [vmem:[%s2961_s2 + $0x8] sm:$0xff] }
 0x4e0   : > { %v1492_v13 = vpack.c.bf16 %v1462_v58, %v1461_v49  ;;  %v1450_v5 = vadd.f32 %v1442_v53, %v1433_v37  ;;  %v1636_v58 = vld [vmem:[%s2961_s2 + $0x20] sm:$0xff] }
 0x4e1   : > { %v1463_v29 = vmax.f32 %v1447_v57, 0.0  ;;  %v1464_v28 = vmax.f32 %v1448_v26, 0.0  ;;  %v1465_v45 = vmax.f32 %v1449_v41, 0.0 }
 0x4e2   : > { %v1466_v46 = vmax.f32 %v1450_v5, 0.0 }
 0x4e3   : > { %v1493_v60 = vpack.c.bf16 %v1464_v28, %v1463_v29 }
 0x4e4   : > { %v1494_v24 = vpack.c.bf16 %v1466_v46, %v1465_v45  ;;  %v1637_v45 = vld [vmem:[%s2961_s2 + $0x28] sm:$0xff] }
 0x4ec   : > { %1564 = vmatmul.bf16.gmra.mxu0 %v1492_v13 }
 0x4fc   : > { %1569 = vmatmul.bf16.gmra.mxu0 %v1493_v60 }
 0x50c   : > { %1574 = vmatmul.bf16.gmra.mxu0 %v1494_v24  ;;  %v1634_v24 = vld [vmem:[%s2961_s2 + $0x10] sm:$0xff] }
 0x51c   : > { %1579 = vmatmul.bf16.gmra.mxu0 %v1495_v44 }
 0x52c   : > { %1584 = vmatmul.bf16.gmra.mxu0 %v1496_v7 }
 0x53c   : > { %1589 = vmatmul.bf16.gmra.mxu0 %v1497_v21 }
 0x54c   : > { %1594 = vmatmul.bf16.gmra.mxu0 %v1498_v4 }
 0x559   : > { %v1560_v43 = vpop.f32.mrf.mxu0 }
 0x55a   : > { %v3310_v51 = vadd.f32 %v3307_v1, %v1560_v43 }
 0x55c   : > { %1728 = vst [vmem:[%s3312_s3] sm:$0xff] %v3310_v51  ;;  %1600 = vrot.lane.b32.xlu0 %v3310_v51, %s2688_s23 }
 0x561   : > { %v1562_v59 = vpop.f32.mrf.mxu0 }
 0x562   : > { %v3319_v12 = vadd.f32 %v3307_v1, %v1562_v59 }
 0x564   : > { %1729 = vst [vmem:[%s3312_s3 + $0x10] sm:$0xff] %v3319_v12  ;;  %1602 = vrot.lane.b32.xlu0 %v3319_v12, %s2688_s23 }
 0x569   : > { %v1565_v55 = vpop.f32.mrf.mxu0 }
 0x56a   : > { %v3326_v53 = vadd.f32 %v3307_v1, %v1565_v55 }
 0x56c   : > { %1730 = vst [vmem:[%s3312_s3 + $0x20] sm:$0xff] %v3326_v53  ;;  %1604 = vrot.lane.b32.xlu1 %v3326_v53, %s2688_s23 }
 0x571   : > { %v1567_v61 = vpop.f32.mrf.mxu0 }
 0x572   : > { %v3333_v27 = vadd.f32 %v3307_v1, %v1567_v61 }
 0x574   : > { %1731 = vst [vmem:[%s3312_s3 + $0x30] sm:$0xff] %v3333_v27  ;;  %1606 = vrot.lane.b32.xlu1 %v3333_v27, %s2688_s23 }
 0x579   : > { %v1570_v52 = vpop.f32.mrf.mxu0 }
 0x57a   : > { %v3340_v50 = vadd.f32 %v3307_v1, %v1570_v52  ;;  %v1635_v52 = vld [vmem:[%s2961_s2 + $0x18] sm:$0xff] }
 0x57c   : > { %1732 = vst [vmem:[%s3312_s3 + $0x40] sm:$0xff] %v3340_v50  ;;  %1608 = vrot.lane.b32.xlu2 %v3340_v50, %s2688_s23 }
 0x581   : > { %v1572_v3 = vpop.f32.mrf.mxu0 }
 0x582   : > { %v3347_v30 = vadd.f32 %v3307_v1, %v1572_v3 }
 0x584   : > { %1733 = vst [vmem:[%s3312_s3 + $0x50] sm:$0xff] %v3347_v30  ;;  %1610 = vrot.lane.b32.xlu2 %v3347_v30, %s2688_s23 }
 0x589   : > { %v1575_v2 = vpop.f32.mrf.mxu0 }
 0x58a   : > { %v3354_v6 = vadd.f32 %v3307_v1, %v1575_v2 }
 0x58c   : > { %1734 = vst [vmem:[%s3312_s3 + $0x60] sm:$0xff] %v3354_v6  ;;  %1612 = vrot.lane.b32.xlu0 %v3354_v6, %s2688_s23 }
 0x591   : > { %v1577_v16 = vpop.f32.mrf.mxu0 }
 0x592   : > { %v3361_v35 = vadd.f32 %v3307_v1, %v1577_v16 }
 0x594   : > { %1735 = vst [vmem:[%s3312_s3 + $0x70] sm:$0xff] %v3361_v35  ;;  %1614 = vrot.lane.b32.xlu1 %v3361_v35, %s2688_s23 }
 0x599   : > { %v1580_v10 = vpop.f32.mrf.mxu0 }
 0x59a   : > { %v3368_v38 = vadd.f32 %v3307_v1, %v1580_v10 }
 0x59c   : > { %1736 = vst [vmem:[%s3312_s3 + $0x80] sm:$0xff] %v3368_v38  ;;  %1616 = vrot.lane.b32.xlu2 %v3368_v38, %s2688_s23 }
 0x5a1   : > { %v1582_v31 = vpop.f32.mrf.mxu0 }
 0x5a2   : > { %v3375_v47 = vadd.f32 %v3307_v1, %v1582_v31 }
 0x5a4   : > { %1737 = vst [vmem:[%s3312_s3 + $0x90] sm:$0xff] %v3375_v47  ;;  %1618 = vrot.lane.b32.xlu0 %v3375_v47, %s2688_s23 }
 0x5a9   : > { %v1585_v32 = vpop.f32.mrf.mxu0 }
 0x5aa   : > { %v3382_v33 = vadd.f32 %v3307_v1, %v1585_v32 }
 0x5ac   : > { %1738 = vst [vmem:[%s3312_s3 + $0xa0] sm:$0xff] %v3382_v33  ;;  %1620 = vrot.lane.b32.xlu1 %v3382_v33, %s2688_s23 }
 0x5b1   : > { %v1587_v56 = vpop.f32.mrf.mxu0 }
 0x5b2   : > { %v3389_v34 = vadd.f32 %v3307_v1, %v1587_v56  ;;  %v1640_v56 = vld [vmem:[%s2961_s2 + $0x40] sm:$0xff] }
 0x5b4   : > { %1739 = vst [vmem:[%s3312_s3 + $0xb0] sm:$0xff] %v3389_v34  ;;  %1622 = vrot.lane.b32.xlu2 %v3389_v34, %s2688_s23 }
 0x5b9   : > { %v1590_v11 = vpop.f32.mrf.mxu0 }
 0x5ba   : > { %v3396_v14 = vadd.f32 %v3307_v1, %v1590_v11 }
 0x5bc   : > { %1740 = vst [vmem:[%s3312_s3 + $0xc0] sm:$0xff] %v3396_v14  ;;  %1624 = vrot.lane.b32.xlu0 %v3396_v14, %s2688_s23 }
 0x5c1   : > { %v1592_v39 = vpop.f32.mrf.mxu0 }
 0x5c2   : > { %v3403_v25 = vadd.f32 %v3307_v1, %v1592_v39 }
 0x5c4   : > { %1741 = vst [vmem:[%s3312_s3 + $0xd0] sm:$0xff] %v3403_v25  ;;  %1626 = vrot.lane.b32.xlu1 %v3403_v25, %s2688_s23 }
 0x5c9   : > { %v1595_v63 = vpop.f32.mrf.mxu0 }
 0x5ca   : > { %v3410_v19 = vadd.f32 %v3307_v1, %v1595_v63 }
 0x5cc   : > { %1742 = vst [vmem:[%s3312_s3 + $0xe0] sm:$0xff] %v3410_v19  ;;  %1628 = vrot.lane.b32.xlu2 %v3410_v19, %s2688_s23 }
 0x5ce   : > { %v1601_v62 = vpop.permute.xlu0 %1600 }
 0x5cf   : > { %v1648_v17 = vmul.f32 0.5, %v1601_v62 }
 0x5d1   : > { %v1664_v54 = vmul.f32 1.442695, %v1648_v17  ;;  %v1597_v20 = vpop.f32.mrf.mxu0 }
 0x5d2   : > { %v3417_v18 = vadd.f32 %v3307_v1, %v1597_v20 }
 0x5d3   : > { %2390 = vpow2.f32 %v1664_v54 }
 0x5d4   : > { %1743 = vst [vmem:[%s3312_s3 + $0xf0] sm:$0xff] %v3417_v18  ;;  %1630 = vrot.lane.b32.xlu0 %v3417_v18, %s2688_s23 }
 0x5d6   : > { %v1609_v15 = vpop.permute.xlu2 %1608  ;;  %v1603_v44 = vpop.permute.xlu0 %1602 }
 0x5d7   : > { %v1652_v8 = vmul.f32 0.5, %v1609_v15  ;;  %v1649_v7 = vmul.f32 0.5, %v1603_v44 }
 0x5d9   : > { %v2391_v9 = vpop.eup %2390  ;;  %v1672_v0 = vmul.f32 1.442695, %v1652_v8  ;;  %v1666_v42 = vmul.f32 1.442695, %v1649_v7  ;;  %v1639_v8 = vld [vmem:[%s2961_s2 + $0x38] sm:$0xff] }
 0x5da   : > { %v1696_v48 = vmul.f32 %v2391_v9, %v1632_v40 }
 0x5db   : > { %2392 = vpow2.f32 %v1672_v0 }
 0x5dc   : > { %v1712_v21 = vadd.f32 %v1696_v48, %v3310_v51  ;;  %2394 = vpow2.f32 %v1666_v42 }
 0x5de   : > { %1744 = vst [vmem:[%s3312_s3 + $0x8] sm:$0xff] %v1712_v21  ;;  %v1611_v4 = vpop.permute.xlu2 %1610  ;;  %v1605_v49 = vpop.permute.xlu1 %1604  ;;  %v1643_v21 = vld [vmem:[%s2961_s2 + $0x58] sm:$0xff] }
 0x5df   : > { %v1653_v13 = vmul.f32 0.5, %v1611_v4  ;;  %v1650_v22 = vmul.f32 0.5, %v1605_v49 }
 0x5e1   : > { %v2393_v57 = vpop.eup %2392  ;;  %v1674_v26 = vmul.f32 1.442695, %v1653_v13  ;;  %v1668_v29 = vmul.f32 1.442695, %v1650_v22 }
 0x5e2   : > { %v2395_v28 = vpop.eup %2394  ;;  %v1700_v60 = vmul.f32 %v2393_v57, %v1636_v58 }
 0x5e3   : > { %v1697_v36 = vmul.f32 %v2395_v28, %v1633_v23  ;;  %2396 = vpow2.f32 %v1674_v26  ;;  %v1641_v23 = vld [vmem:[%s2961_s2 + $0x48] sm:$0xff] }
 0x5e4   : > { %v1716_v37 = vadd.f32 %v1700_v60, %v3340_v50  ;;  %2398 = vpow2.f32 %v1668_v29 }
 0x5e5   : > { %v1713_v41 = vadd.f32 %v1697_v36, %v3319_v12  ;;  %v1642_v36 = vld [vmem:[%s2961_s2 + $0x50] sm:$0xff] }
 0x5e6   : > { %1748 = vst [vmem:[%s3312_s3 + $0x48] sm:$0xff] %v1716_v37  ;;  %v1607_v5 = vpop.permute.xlu1 %1606 }
 0x5e7   : > { %1745 = vst [vmem:[%s3312_s3 + $0x18] sm:$0xff] %v1713_v41  ;;  %v1651_v46 = vmul.f32 0.5, %v1607_v5 }
 0x5e9   : > { %v2397_v1 = vpop.eup %2396  ;;  %v1670_v43 = vmul.f32 1.442695, %v1651_v46 }
 0x5ea   : > { %v2399_v51 = vpop.eup %2398  ;;  %v1701_v59 = vmul.f32 %v2397_v1, %v1637_v45 }
 0x5eb   : > { %v1698_v55 = vmul.f32 %v2399_v51, %v1634_v24  ;;  %2400 = vpow2.f32 %v1670_v43  ;;  %v1646_v24 = vld [vmem:[%s2961_s2 + $0x70] sm:$0xff] }
 0x5ec   : > { %v1717_v61 = vadd.f32 %v1701_v59, %v3347_v30 }
 0x5ed   : > { %v1714_v12 = vadd.f32 %v1698_v55, %v3326_v53 }
 0x5ee   : > { %1749 = vst [vmem:[%s3312_s3 + $0x58] sm:$0xff] %v1717_v61  ;;  %v1644_v61 = vld [vmem:[%s2961_s2 + $0x60] sm:$0xff] }
 0x5ef   : > { %1746 = vst [vmem:[%s3312_s3 + $0x28] sm:$0xff] %v1714_v12 }
 0x5f1   : > { %v2401_v50 = vpop.eup %2400 }
 0x5f2   : > { %v1699_v3 = vmul.f32 %v2401_v50, %v1635_v52 }
 0x5f4   : > { %v1715_v2 = vadd.f32 %v1699_v3, %v3333_v27  ;;  %v1638_v27 = vld [vmem:[%s2961_s2 + $0x30] sm:$0xff] }
 0x5f6   : > { %1747 = vst [vmem:[%s3312_s3 + $0x38] sm:$0xff] %v1715_v2  ;;  %v1617_v16 = vpop.permute.xlu2 %1616  ;;  %v1645_v2 = vld [vmem:[%s2961_s2 + $0x68] sm:$0xff] }
 0x5f7   : > { %v1656_v10 = vmul.f32 0.5, %v1617_v16 }
 0x5f9   : > { %v1680_v31 = vmul.f32 1.442695, %v1656_v10 }
 0x5fb   : > { %2402 = vpow2.f32 %v1680_v31 }
 0x5fe   : > { %v1613_v32 = vpop.permute.xlu0 %1612 }
 0x5ff   : > { %v1654_v30 = vmul.f32 0.5, %v1613_v32 }
 0x601   : > { %v2403_v11 = vpop.eup %2402  ;;  %v1676_v53 = vmul.f32 1.442695, %v1654_v30 }
 0x602   : > { %v1704_v39 = vmul.f32 %v2403_v11, %v1640_v56 }
 0x603   : > { %2404 = vpow2.f32 %v1676_v53 }
 0x604   : > { %v1720_v63 = vadd.f32 %v1704_v39, %v3368_v38 }
 0x606   : > { %1752 = vst [vmem:[%s3312_s3 + $0x88] sm:$0xff] %v1720_v63  ;;  %v1615_v62 = vpop.permute.xlu1 %1614 }
 0x607   : > { %v1655_v17 = vmul.f32 0.5, %v1615_v62 }
 0x609   : > { %v2405_v54 = vpop.eup %2404  ;;  %v1678_v20 = vmul.f32 1.442695, %v1655_v17 }
 0x60a   : > { %v1702_v15 = vmul.f32 %v2405_v54, %v1638_v27 }
 0x60b   : > { %2406 = vpow2.f32 %v1678_v20 }
 0x60c   : > { %v1718_v44 = vadd.f32 %v1702_v15, %v3354_v6 }
 0x60e   : > { %1750 = vst [vmem:[%s3312_s3 + $0x68] sm:$0xff] %v1718_v44  ;;  %v1623_v40 = vpop.permute.xlu2 %1622 }
 0x60f   : > { %v1659_v7 = vmul.f32 0.5, %v1623_v40 }
 0x611   : > { %v2407_v9 = vpop.eup %2406  ;;  %v1686_v38 = vmul.f32 1.442695, %v1659_v7 }
 0x612   : > { %v1703_v0 = vmul.f32 %v2407_v9, %v1639_v8 }
 0x613   : > { %2408 = vpow2.f32 %v1686_v38 }
 0x614   : > { %v1719_v42 = vadd.f32 %v1703_v0, %v3361_v35 }
 0x616   : > { %1751 = vst [vmem:[%s3312_s3 + $0x78] sm:$0xff] %v1719_v42  ;;  %v1619_v48 = vpop.permute.xlu0 %1618 }
 0x617   : > { %v1657_v4 = vmul.f32 0.5, %v1619_v48 }
 0x619   : > { %v2409_v49 = vpop.eup %2408  ;;  %v1682_v6 = vmul.f32 1.442695, %v1657_v4 }
 0x61a   : > { %v1707_v58 = vmul.f32 %v2409_v49, %v1643_v21 }
 0x61b   : > { %2410 = vpow2.f32 %v1682_v6 }
 0x61c   : > { %v1723_v13 = vadd.f32 %v1707_v58, %v3389_v34 }
 0x61e   : > { %1755 = vst [vmem:[%s3312_s3 + $0xb8] sm:$0xff] %v1723_v13  ;;  %v1621_v22 = vpop.permute.xlu1 %1620 }
 0x61f   : > { %v1658_v57 = vmul.f32 0.5, %v1621_v22 }
 0x621   : > { %v2411_v26 = vpop.eup %2410  ;;  %v1684_v35 = vmul.f32 1.442695, %v1658_v57 }
 0x622   : > { %v1705_v29 = vmul.f32 %v2411_v26, %v1641_v23 }
 0x623   : > { %2412 = vpow2.f32 %v1684_v35 }
 0x624   : > { %v1721_v28 = vadd.f32 %v1705_v29, %v3375_v47 }
 0x626   : > { %1753 = vst [vmem:[%s3312_s3 + $0x98] sm:$0xff] %v1721_v28  ;;  %v1629_v60 = vpop.permute.xlu2 %1628 }
 0x627   : > { %v1662_v37 = vmul.f32 0.5, %v1629_v60 }
 0x629   : > { %v2413_v41 = vpop.eup %2412  ;;  %v1692_v34 = vmul.f32 1.442695, %v1662_v37 }
 0x62a   : > { %v1706_v5 = vmul.f32 %v2413_v41, %v1642_v36 }
 0x62b   : > { %2414 = vpow2.f32 %v1692_v34 }
 0x62c   : > { %v1722_v45 = vadd.f32 %v1706_v5, %v3382_v33 }
 0x62e   : > { %1754 = vst [vmem:[%s3312_s3 + $0xa8] sm:$0xff] %v1722_v45  ;;  %v1625_v46 = vpop.permute.xlu0 %1624 }
 0x62f   : > { %v1660_v1 = vmul.f32 0.5, %v1625_v46 }
 0x631   : > { %v2415_v43 = vpop.eup %2414  ;;  %v1688_v47 = vmul.f32 1.442695, %v1660_v1 }
 0x632   : > { %v1710_v51 = vmul.f32 %v2415_v43, %v1646_v24 }
 0x633   : > { %2416 = vpow2.f32 %v1688_v47 }
 0x634   : > { %v1726_v59 = vadd.f32 %v1710_v51, %v3410_v19 }
 0x636   : > { %1758 = vst [vmem:[%s3312_s3 + $0xe8] sm:$0xff] %v1726_v59  ;;  %v1627_v55 = vpop.permute.xlu1 %1626 }
 0x637   : > { %v1661_v12 = vmul.f32 0.5, %v1627_v55 }
 0x639   : > { %v2417_v52 = vpop.eup %2416  ;;  %v1690_v33 = vmul.f32 1.442695, %v1661_v12 }
 0x63a   : > { %v1708_v50 = vmul.f32 %v2417_v52, %v1644_v61 }
 0x63b   : > { %2418 = vpow2.f32 %v1690_v33 }
 0x63c   : > { %v1724_v3 = vadd.f32 %v1708_v50, %v3396_v14  ;;  %v1647_v14 = vld [vmem:[%s2961_s2 + $0x78] sm:$0xff] }
 0x63e   : > { %1756 = vst [vmem:[%s3312_s3 + $0xc8] sm:$0xff] %v1724_v3 }
 0x641   : > { %v2419_v16 = vpop.eup %2418 }
 0x642   : > { %v1709_v10 = vmul.f32 %v2419_v16, %v1645_v2 }
 0x644   : > { %v1725_v31 = vadd.f32 %v1709_v10, %v3403_v25 }
 0x646   : > { %1757 = vst [vmem:[%s3312_s3 + $0xd8] sm:$0xff] %v1725_v31  ;;  %v1631_v19 = vpop.permute.xlu0 %1630 }
 0x647   : > { %v1663_v32 = vmul.f32 0.5, %v1631_v19 }
 0x649   : > { %v1694_v56 = vmul.f32 1.442695, %v1663_v32 }
 0x64b   : > { %2420 = vpow2.f32 %v1694_v56 }
 0x651   : > { %v2421_v30 = vpop.eup %2420 }
 0x652   : > { %v1711_v11 = vmul.f32 %v2421_v30, %v1647_v14 }
 0x654   : > { %v1727_v25 = vadd.f32 %v1711_v11, %v3417_v18 }
 0x656   : > { %1759 = vst [vmem:[%s3312_s3 + $0xf8] sm:$0xff] %v1727_v25 }
 0x657   : > { %2629 = shalt.err (!%p2626_p2)
}
 0x658   : > { %s2689_s12 = smov 256   ;;  %s2690_s26 = smov 16  }
 0x659   : > { %2310 = dma.vmem_to_hbm [thread:$0]  (%p2851_p7), %s1774_s0, 4096, %s1776_s16, %s1761_s13, %s2689_s12, %s2689_s12, %s2690_s26  }
 0x65a PF: > { %s1790_s9 = sand.u32 1, %s2668_s24   ;;  %p3550_p4 = scmp.ge.s32.totalorder %s2680_s27, 2 }
 0x65b   : > { %s1791_s21 = scalar_lea.sflag [#allocation4], %s1790_s9 }
 0x65c   : > { %p2333_p10 = pnand %p3550_p4, %p2855_p9 }
 0x65e   : > { %p2334_p0 = pneg %p2333_p10 }
 0x660   : > { %2663 = dma.done.wait (%p2334_p0), %s1791_s21, 4096  }
 0x661   : > { %2665 = vsyncadd (%p2334_p0), %s1791_s21, 4294963200  ;;  %s3551_s27 = sld [smem:[#allocation20_spill]]  ;;  %s3554_s24 = smov %s2672_s25 }
 0x662   : > { %s3552_s14 = sld [smem:[#allocation19_spill]] }
 0x663   : > { %s3553_s26 = sld [smem:[#allocation21_spill]] }
 0x667   : > { %p27_p12 = scmp.ge.s32.totalorder %s3551_s27, 4  }
 0x668   : > { %s3555_s25 = smov %s3552_s14 }
 0x669   :  { %29 = sbr.rel (!%p27_p12) target bundleno = 17 (0x11), region = 149 }
 0x66e   :  { %1797 = vsyncpa [#allocation3], 1 }
 0x66f   :  { %1799 = vsyncpa [#allocation3 + $0x1], 1 }
 0x670   :  { %1800 = vsyncpa [#allocation6], 1 }
 0x671   :  { %1802 = vsyncpa [#allocation6 + $0x1], 1 }
 0x672   :  { %1803 = vsyncpa [#allocation9], 1 }
 0x673   :  { %1805 = vsyncpa [#allocation9 + $0x1], 1 }
 0x674   :  { %1806 = vsyncpa [#allocation12], 1 }
 0x675   :  { %1808 = vsyncpa [#allocation12 + $0x1], 1 }
 0x676   :  { %1809 = vsyncpa [#allocation4], 1 }
 0x677   :  { %1811 = vsyncpa [#allocation4 + $0x1], 1 }

</bundles_post_ra>
